<compile_context>
chip_gen: v7x
topology: tpu7x:2x2x1
jax: 0.10.0
libtpu: 0.0.40
codegen_flags: <defaults>
</compile_context>

<pallas_src>
import functools

import jax
import jax.numpy as jnp
from jax.experimental import pallas as pl
from jax.experimental.pallas import tpu as pltpu

H = 64      # hidden_dim
H2 = 128    # hidden_dim * 2 (== TPU lane width -> everything kept lane-dense)


def _round_up(n, m):
    return ((n + m - 1) // m) * m


def pack_params(params, state_dim, action_dim):
    """Pack Critic parameters into two lane-dense slabs (done once, amortized).

    Returns:
      packed_w: bf16 [K1 + 256, 128] weight slab (all blocks 16-row aligned):
          rows [0:K1]        W1  ([S+A, 64] in cols 0:64; K1 = round16(S+A))
          rows [K1:K1+128]   W2  ([64, 128]; rows 64:128 zero)
          rows [K1+128:+256] W3  ([128, 64] in cols 0:64)
      packed_v: f32 [8, 128] epilogue slab:
          row0=b1 (cols 0:64), row1=b2, row2=b3 (cols 0:64),
          row3=w4 as a row (cols 0:64), row4=b4 broadcast over all lanes.
    """
    (w1, b1), (w2, b2), (w3, b3), (w4, b4) = params
    sa = state_dim + action_dim
    k1 = _round_up(sa, 16)

    w = jnp.zeros((k1 + 2 * H2, H2), jnp.float32)
    w = w.at[0:sa, :H].set(w1)                      # W1 (x rows then a rows)
    w = w.at[k1:k1 + H, :].set(w2)                  # W2
    w = w.at[k1 + H2:k1 + 2 * H2, :H].set(w3)       # W3
    packed_w = w.astype(jnp.bfloat16)

    v = jnp.zeros((8, H2), jnp.float32)
    v = v.at[0, :H].set(b1[0])
    v = v.at[1, :].set(b2[0])
    v = v.at[2, :H].set(b3[0])
    v = v.at[3, :H].set(w4[:, 0])
    v = v.at[4, :].set(b4[0, 0])                    # b4 broadcast across lanes
    return packed_w, v


def _critic_kernel(x_ref, a_ref, w_ref, v_ref, out_ref, xa_ref, *,
                   state_dim, action_dim):
    S, A = state_dim, action_dim
    bb, K1 = xa_ref.shape

    # --- fused concat: assemble xa = [x | a | 0-pad] in a VMEM scratch -------
    if K1 > S + A:                                   # static branch
        xa_ref[:, S + A:] = jnp.zeros((bb, K1 - (S + A)), jnp.float32)
    xa_ref[:, :S] = x_ref[...]
    xa_ref[:, S:S + A] = a_ref[...]
    xa = xa_ref[...].astype(jnp.bfloat16)            # [bb, K1]

    # --- weights (bf16, resident) and epilogue constants (f32) ---------------
    w1 = w_ref[0:K1, :]                               # [K1, 128] (cols 64: zero)
    w2 = w_ref[K1:K1 + H2, :]                         # [128, 128]
    w3 = w_ref[K1 + H2:K1 + 2 * H2, :]                # [128, 128] (cols 64: zero)
    v = v_ref[...]                                    # [8, 128] f32
    b1, b2, b3 = v[0:1, :], v[1:2, :], v[2:3, :]
    w4r, b4 = v[3:4, :], v[4:5, :]

    # --- fc1 / fc2 / fc3: bf16 MXU matmuls, f32 accumulate, f32 epilogue -----
    h1 = jnp.maximum(
        jnp.dot(xa, w1, preferred_element_type=jnp.float32) + b1, 0.0)
    h2 = jnp.maximum(
        jnp.dot(h1.astype(jnp.bfloat16), w2,
                preferred_element_type=jnp.float32) + b2, 0.0)
    h3 = jnp.maximum(
        jnp.dot(h2.astype(jnp.bfloat16), w3,
                preferred_element_type=jnp.float32) + b3, 0.0)

    # --- fc4 (N=1): VPU multiply + XLU lane reduce; lane-dense output --------
    q = jnp.sum(h3 * w4r, axis=-1, keepdims=True)     # [bb, 1]
    out_ref[...] = (q + b4).astype(out_ref.dtype)     # broadcast to [bb, 128]


@functools.partial(jax.jit,
                   static_argnames=("state_dim", "action_dim", "block_b"))
def critic_forward(x, a, packed_w, packed_v, *, state_dim, action_dim,
                   block_b=256):
    """x: [B, S], a: [B, A] (f32), packed_w/packed_v from pack_params -> [B, 1]."""
    B = x.shape[0]
    bb = min(block_b, _round_up(B, 8))            # don't over-pad tiny batches
    B_pad = _round_up(B, bb)
    if B_pad != B:
        x = jnp.pad(x, ((0, B_pad - B), (0, 0)))
        a = jnp.pad(a, ((0, B_pad - B), (0, 0)))

    K1 = packed_w.shape[0] - 2 * H2
    grid = (B_pad // bb,)
    kernel = functools.partial(_critic_kernel,
                               state_dim=state_dim, action_dim=action_dim)

    flops = 2 * B_pad * (K1 * H2 + H2 * H2 + H2 * H2 + H2)
    bytes_accessed = (packed_w.size * 2 + packed_v.size * 4
                      + B_pad * (state_dim + action_dim + H2) * 4)

    out = pl.pallas_call(
        kernel,
        out_shape=jax.ShapeDtypeStruct((B_pad, H2), jnp.float32),
        grid_spec=pltpu.PrefetchScalarGridSpec(
            num_scalar_prefetch=0,
            grid=grid,
            in_specs=[
                pl.BlockSpec((bb, state_dim), lambda i: (i, 0)),
                pl.BlockSpec((bb, action_dim), lambda i: (i, 0)),
                # Parameter slabs: constant block index -> DMA'd once, resident.
                pl.BlockSpec((packed_w.shape[0], H2), lambda i: (0, 0)),
                pl.BlockSpec((8, H2), lambda i: (0, 0)),
            ],
            out_specs=pl.BlockSpec((bb, H2), lambda i: (i, 0)),
            scratch_shapes=[pltpu.VMEM((bb, K1), jnp.float32)],
        ),
        compiler_params=pltpu.CompilerParams(
            dimension_semantics=("parallel",)),       # v7x: shard over 2 TCs
        cost_estimate=pl.CostEstimate(
            flops=flops, transcendentals=0, bytes_accessed=bytes_accessed),
    )(x, a, packed_w, packed_v)
    return out[:B, :1]


def init_linear(key, fan_in, fan_out):
    """Deterministic PyTorch-style uniform init; weight stored as [in, out]."""
    kw, kb = jax.random.split(key)
    bound = 1.0 / jnp.sqrt(jnp.float32(fan_in))
    w = jax.random.uniform(kw, (fan_in, fan_out), jnp.float32, -bound, bound)
    b = jax.random.uniform(kb, (1, fan_out), jnp.float32, -bound, bound)
    return w, b


def make_params(key, state_dim, action_dim, hidden_dim=64):
    k1, k2, k3, k4 = jax.random.split(key, 4)
    in_dim = state_dim + action_dim
    return (
        init_linear(k1, in_dim, hidden_dim),
        init_linear(k2, hidden_dim, hidden_dim * 2),
        init_linear(k3, hidden_dim * 2, hidden_dim),
        init_linear(k4, hidden_dim, 1),
    )


if __name__ == "__main__":
    key = jax.random.PRNGKey(0)
    k_params, k_x, k_a = jax.random.split(key, 3)

    state_dim, action_dim, hidden_dim = 12, 4, 64
    params = make_params(k_params, state_dim, action_dim, hidden_dim)
    packed_w, packed_v = pack_params(params, state_dim, action_dim)  # once

    # Pure-JAX f32 reference (original unpacked parameters).
    def ref(x, a, params):
        h = jnp.concatenate([x, a], axis=1)
        (w1, b1), (w2, b2), (w3, b3), (w4, b4) = params
        h = jnp.maximum(h @ w1 + b1, 0.0)
        h = jnp.maximum(h @ w2 + b2, 0.0)
        h = jnp.maximum(h @ w3 + b3, 0.0)
        return h @ w4 + b4

    # batch=512 exercises the pipelined grid (2 blocks of 256, megacore-able);
    # batch=8 exercises the small padded single-block path.
    for batch in (512, 8):
        kx, ka = jax.random.split(jax.random.fold_in(k_x, batch))
        x = jax.random.normal(kx, (batch, state_dim), jnp.float32)
        a = jax.random.normal(ka, (batch, action_dim), jnp.float32)

        q = critic_forward(x, a, packed_w, packed_v,
                           state_dim=state_dim, action_dim=action_dim)
        jax.block_until_ready(q)

        q_ref = ref(x, a, params)
        assert q.shape == (batch, 1)
        # bf16 weights/activations with f32 accumulation -> loosened tolerance.
        assert jnp.allclose(q, q_ref, atol=3e-2, rtol=3e-2), \
            float(jnp.max(jnp.abs(q - q_ref)))

    print("KERNEL_OK")
</pallas_src>

<mosaic_0001>
module attributes {stable_mosaic.version = 11 : i64} {
  func.func @_critic_kernel(%arg0: i32, %arg1: memref<256x12xf32, #tpu.memory_space<vmem>>, %arg2: memref<256x4xf32, #tpu.memory_space<vmem>>, %arg3: memref<272x128xbf16, #tpu.memory_space<vmem>>, %arg4: memref<8x128xf32, #tpu.memory_space<vmem>>, %arg5: memref<256x128xf32, #tpu.memory_space<vmem>>, %arg6: memref<256x16xf32, #tpu.memory_space<vmem>>) attributes {dimension_semantics = [#tpu.dimension_semantics<parallel>], iteration_bounds = array<i64: 2>, scalar_prefetch = 0 : i64, scratch_operands = 1 : i64, tpu.core_type = #tpu.core_type<tc>, window_params = [{transform_indices = @transform_0, window_bounds = array<i64: 256, 12>}, {transform_indices = @transform_1, window_bounds = array<i64: 256, 4>}, {pipeline_mode = #tpu.pipeline_mode<synchronous>, transform_indices = @transform_2, window_bounds = array<i64: 272, 128>}, {pipeline_mode = #tpu.pipeline_mode<synchronous>, transform_indices = @transform_3, window_bounds = array<i64: 8, 128>}, {transform_indices = @transform_4, window_bounds = array<i64: 256, 128>}]} {
    %c0 = arith.constant 0 : index
    %c0_0 = arith.constant 0 : index
    %0 = vector.load %arg1[%c0, %c0_0] : memref<256x12xf32, #tpu.memory_space<vmem>>, vector<256x12xf32>
    %c0_1 = arith.constant 0 : index
    %c0_2 = arith.constant 0 : index
    %1 = vector.load %arg6[%c0_1, %c0_2] : memref<256x16xf32, #tpu.memory_space<vmem>>, vector<256x12xf32>
    tpu.vector_store %arg6[%c0_1, %c0_2], %0 {strides = array<i32>} : memref<256x16xf32, #tpu.memory_space<vmem>>, vector<256x12xf32>,
    %c0_3 = arith.constant 0 : index
    %c0_4 = arith.constant 0 : index
    %2 = vector.load %arg2[%c0_3, %c0_4] : memref<256x4xf32, #tpu.memory_space<vmem>>, vector<256x4xf32>
    %c0_5 = arith.constant 0 : index
    %c12 = arith.constant 12 : index
    %3 = vector.load %arg6[%c0_5, %c12] : memref<256x16xf32, #tpu.memory_space<vmem>>, vector<256x4xf32>
    tpu.vector_store %arg6[%c0_5, %c12], %2 {strides = array<i32>} : memref<256x16xf32, #tpu.memory_space<vmem>>, vector<256x4xf32>,
    %c0_6 = arith.constant 0 : index
    %c0_7 = arith.constant 0 : index
    %4 = vector.load %arg6[%c0_6, %c0_7] : memref<256x16xf32, #tpu.memory_space<vmem>>, vector<256x16xf32>
    %5 = arith.truncf %4 : vector<256x16xf32> to vector<256x16xbf16>
    %c0_8 = arith.constant 0 : index
    %c0_9 = arith.constant 0 : index
    %6 = vector.load %arg3[%c0_8, %c0_9] : memref<272x128xbf16, #tpu.memory_space<vmem>>, vector<16x128xbf16>
    %c16 = arith.constant 16 : index
    %c0_10 = arith.constant 0 : index
    %7 = vector.load %arg3[%c16, %c0_10] : memref<272x128xbf16, #tpu.memory_space<vmem>>, vector<128x128xbf16>
    %c144 = arith.constant 144 : index
    %c0_11 = arith.constant 0 : index
    %8 = vector.load %arg3[%c144, %c0_11] : memref<272x128xbf16, #tpu.memory_space<vmem>>, vector<128x128xbf16>
    %c0_12 = arith.constant 0 : index
    %c0_13 = arith.constant 0 : index
    %9 = vector.load %arg4[%c0_12, %c0_13] : memref<8x128xf32, #tpu.memory_space<vmem>>, vector<8x128xf32>
    %10 = vector.extract_strided_slice %9 {offsets = [0, 0], sizes = [1, 128], strides = [1, 1]} : vector<8x128xf32> to vector<1x128xf32>
    %11 = vector.extract_strided_slice %9 {offsets = [1, 0], sizes = [1, 128], strides = [1, 1]} : vector<8x128xf32> to vector<1x128xf32>
    %12 = vector.extract_strided_slice %9 {offsets = [2, 0], sizes = [1, 128], strides = [1, 1]} : vector<8x128xf32> to vector<1x128xf32>
    %13 = vector.extract_strided_slice %9 {offsets = [3, 0], sizes = [1, 128], strides = [1, 1]} : vector<8x128xf32> to vector<1x128xf32>
    %14 = vector.extract_strided_slice %9 {offsets = [4, 0], sizes = [1, 128], strides = [1, 1]} : vector<8x128xf32> to vector<1x128xf32>
    %cst = arith.constant dense<0.000000e+00> : vector<256x128xf32>
    %15 = tpu.matmul %5, %6, %cst {dimension_numbers = #tpu.dot_dimension_numbers<[1], [0], [0], [1], [0, 0, 1, 1], [], []>} : vector<256x16xbf16>, vector<16x128xbf16>, vector<256x128xf32> -> vector<256x128xf32>
    %16 = vector.broadcast %10 : vector<1x128xf32> to vector<256x128xf32>
    %17 = arith.addf %15, %16 : vector<256x128xf32>
    %cst_14 = arith.constant 0.000000e+00 : f32
    %18 = vector.broadcast %cst_14 : f32 to vector<256x128xf32>
    %19 = arith.maximumf %17, %18 : vector<256x128xf32>
    %20 = arith.truncf %19 : vector<256x128xf32> to vector<256x128xbf16>
    %cst_15 = arith.constant dense<0.000000e+00> : vector<256x128xf32>
    %21 = tpu.matmul %20, %7, %cst_15 {dimension_numbers = #tpu.dot_dimension_numbers<[1], [0], [0], [1], [0, 0, 1, 1], [], []>} : vector<256x128xbf16>, vector<128x128xbf16>, vector<256x128xf32> -> vector<256x128xf32>
    %22 = vector.broadcast %11 : vector<1x128xf32> to vector<256x128xf32>
    %23 = arith.addf %21, %22 : vector<256x128xf32>
    %cst_16 = arith.constant 0.000000e+00 : f32
    %24 = vector.broadcast %cst_16 : f32 to vector<256x128xf32>
    %25 = arith.maximumf %23, %24 : vector<256x128xf32>
    %26 = arith.truncf %25 : vector<256x128xf32> to vector<256x128xbf16>
    %cst_17 = arith.constant dense<0.000000e+00> : vector<256x128xf32>
    %27 = tpu.matmul %26, %8, %cst_17 {dimension_numbers = #tpu.dot_dimension_numbers<[1], [0], [0], [1], [0, 0, 1, 1], [], []>} : vector<256x128xbf16>, vector<128x128xbf16>, vector<256x128xf32> -> vector<256x128xf32>
    %28 = vector.broadcast %12 : vector<1x128xf32> to vector<256x128xf32>
    %29 = arith.addf %27, %28 : vector<256x128xf32>
    %cst_18 = arith.constant 0.000000e+00 : f32
    %30 = vector.broadcast %cst_18 : f32 to vector<256x128xf32>
    %31 = arith.maximumf %29, %30 : vector<256x128xf32>
    %32 = vector.broadcast %13 : vector<1x128xf32> to vector<256x128xf32>
    %33 = arith.mulf %31, %32 : vector<256x128xf32>
    %cst_19 = arith.constant dense<0.000000e+00> : vector<256xf32>
    %34 = vector.multi_reduction <add>, %33, %cst_19 [1] : vector<256x128xf32> to vector<256xf32>
    %35 = vector.shape_cast %34 : vector<256xf32> to vector<256x1xf32>
    %36 = vector.broadcast %35 : vector<256x1xf32> to vector<256x128xf32>
    %37 = vector.broadcast %14 : vector<1x128xf32> to vector<256x128xf32>
    %38 = arith.addf %36, %37 : vector<256x128xf32>
    %c0_20 = arith.constant 0 : index
    %c0_21 = arith.constant 0 : index
    %39 = vector.load %arg5[%c0_20, %c0_21] : memref<256x128xf32, #tpu.memory_space<vmem>>, vector<256x128xf32>
    tpu.vector_store %arg5[%c0_20, %c0_21], %38 {strides = array<i32>} : memref<256x128xf32, #tpu.memory_space<vmem>>, vector<256x128xf32>,
    return
  }
  func.func @transform_0(%arg0: i32) -> (i32, i32) {
    %c0_i32 = arith.constant 0 : i32
    %c0_i32_0 = arith.constant 0 : i32
    return %arg0, %c0_i32 : i32, i32
  }
  func.func @transform_1(%arg0: i32) -> (i32, i32) {
    %c0_i32 = arith.constant 0 : i32
    %c0_i32_0 = arith.constant 0 : i32
    return %arg0, %c0_i32 : i32, i32
  }
  func.func @transform_2(%arg0: i32) -> (i32, i32) {
    %c0_i32 = arith.constant 0 : i32
    %c0_i32_0 = arith.constant 0 : i32
    %c0_i32_1 = arith.constant 0 : i32
    return %c0_i32, %c0_i32_0 : i32, i32
  }
  func.func @transform_3(%arg0: i32) -> (i32, i32) {
    %c0_i32 = arith.constant 0 : i32
    %c0_i32_0 = arith.constant 0 : i32
    %c0_i32_1 = arith.constant 0 : i32
    return %c0_i32, %c0_i32_0 : i32, i32
  }
  func.func @transform_4(%arg0: i32) -> (i32, i32) {
    %c0_i32 = arith.constant 0 : i32
    %c0_i32_0 = arith.constant 0 : i32
    return %arg0, %c0_i32 : i32, i32
  }
}

</mosaic_0001>

<bundles_post_ra>
// kernel: critic_forward.1
= control target key start
LH: loop header
LB: loop body
LE: loop exit
PB: predicated region body
PF: predicated region fallthrough
CT: control target
= control target key end

     0   :  { %s1878_s15 = smov 0   ;;  %s2359_s0 = inlined_call_operand.vmem [shape: f32[512,12], index: 0, kind: input, shape index: {}]   ;;  %s2360_s1 = inlined_call_operand.vmem [shape: f32[512,4], index: 1, kind: input, shape index: {}]   ;;  %s2361_s2 = inlined_call_operand.vmem [shape: bf16[272,128], index: 2, kind: input, shape index: {}]   ;;  %s2362_s3 = inlined_call_operand.vmem [shape: f32[8,128], index: 3, kind: input, shape index: {}]   ;;  %s2363_s4 = inlined_call_operand.vmem [shape: f32[512,128], index: 4, kind: output, shape index: {}]  }
   0x1 LB: > { %s1575_s16 = sadd.s32 4294967295, %s1850_s15   ;;  %p1579_p0 = scmp.ge.s32.totalorder %s1850_s15, 1  ;;  %s1850_s15 = sphi %s1878_s15, %s14_s15  }
   0x2   : > { %p174_p1 = scmp.lt.s32.totalorder %s1850_s15, 3 }
   0x4   : > { %p175_p2 = pnand %p1579_p0, %p174_p1 }
   0x5   : > { %s1580_s17 = sshll.u32 (!%p175_p2), %s1575_s16, 5  ;;  %v1827_v0 = vld [vmem:[%s2361_s2] sm:$0xff] (!%p175_p2)   ;;  %s1852_s24 = smov (!%p175_p2), 12   ;;  %vm256_vm0 = vcmask (!%p175_p2), 97280   ;;  %vm449_vm1 = vcmask (!%p175_p2), 130144   ;;  %vm575_vm2 = vcmask (!%p175_p2), 130048  }
   0x6   : > { %178 = sbr.rel (%p175_p2) target bundleno = 1018 (0x3fa), region = 36  ;;  %p206_p3 = scmp.lt.s32.totalorder (!%p175_p2), %s1580_s17, 63  ;;  %1686 = vmatprep.subr.bf16.mxu0 (!%p175_p2), %v1827_v0  ;;  %1816 = vmatprep.subr.bf16.mxu1 (!%p175_p2), %v1827_v0 }
   0x7   : > { %1687 = vmatpush3.bf16.msra.mxu0 (!%p175_p2), %v1827_v0  ;;  %1817 = vmatpush3.bf16.msra.mxu1 (!%p175_p2), %v1827_v0 }
   0xd   : > { %s2365_s17 = smov (!%p206_p3, %s1580_s17), 63 }
   0xe   : > { %s1889_s20 = sshll.u32 %s2365_s17, 3 }
   0xf   : > { %s1895_s23 = scalar_lea.vmem %s2360_s1, %s1889_s20  ;;  %s1911_s27 = scalar_lea.vmem %s2359_s0, %s1889_s20 }
  0x10   : > { %v291_v1 = vld [vmem:[%s1895_s23 + $0x10] sm:$0xff]  ;;  %v289_v2 = vld [vmem:[%s1895_s23] sm:$0xff]  ;;  %v292_v3 = vld [vmem:[%s1895_s23 + $0x18] sm:$0xff]  ;;  %s2290_s14 = scalar_lea.vmem %s2363_s4, %s1889_s20 }
  0x11   : > { %357 = vrot.lane.b32.xlu1 %v291_v1, %s1852_s24  ;;  %353 = vrot.lane.b32.xlu0 %v289_v2, %s1852_s24  ;;  %v290_v4 = vld [vmem:[%s1895_s23 + $0x8] sm:$0xff]  ;;  %v293_v6 = vld [vmem:[%s1895_s23 + $0x20] sm:$0xff] }
  0x12   : > { %v294_v5 = vld [vmem:[%s1895_s23 + $0x28] sm:$0xff]  ;;  %v296_v7 = vld [vmem:[%s1895_s23 + $0x38] sm:$0xff]  ;;  %v295_v8 = vld [vmem:[%s1895_s23 + $0x30] sm:$0xff] }
  0x13   : > { %v226_v9 = vld [vmem:[%s1911_s27 + $0x10] sm:$0xff]  ;;  %v298_v10 = vld [vmem:[%s1895_s23 + $0x48] sm:$0xff]  ;;  %v297_v11 = vld [vmem:[%s1895_s23 + $0x40] sm:$0xff] }
  0x14   : > { %259 = vst.msk [vmem:[#allocation2 + $0x10] sm:$0xff] %vm256_vm0, %v226_v9  ;;  %v224_v12 = vld [vmem:[%s1911_s27] sm:$0xff]  ;;  %v227_v13 = vld [vmem:[%s1911_s27 + $0x18] sm:$0xff]  ;;  %v225_v14 = vld [vmem:[%s1911_s27 + $0x8] sm:$0xff] }
  0x15   : > { %359 = vrot.lane.b32.xlu1 %v292_v3, %s1852_s24  ;;  %355 = vrot.lane.b32.xlu0 %v290_v4, %s1852_s24  ;;  %257 = vst.msk [vmem:[#allocation2] sm:$0xff] %vm256_vm0, %v224_v12  ;;  %260 = vst.msk [vmem:[#allocation2 + $0x18] sm:$0xff] %vm256_vm0, %v227_v13  ;;  %v229_v15 = vld [vmem:[%s1911_s27 + $0x28] sm:$0xff]  ;;  %v228_v16 = vld [vmem:[%s1911_s27 + $0x20] sm:$0xff] }
  0x16   : > { %258 = vst.msk [vmem:[#allocation2 + $0x8] sm:$0xff] %vm256_vm0, %v225_v14  ;;  %262 = vst.msk [vmem:[#allocation2 + $0x28] sm:$0xff] %vm256_vm0, %v229_v15  ;;  %v231_v17 = vld [vmem:[%s1911_s27 + $0x38] sm:$0xff]  ;;  %v230_v18 = vld [vmem:[%s1911_s27 + $0x30] sm:$0xff] }
  0x17   : > { %261 = vst.msk [vmem:[#allocation2 + $0x20] sm:$0xff] %vm256_vm0, %v228_v16  ;;  %v233_v19 = vld [vmem:[%s1911_s27 + $0x48] sm:$0xff]  ;;  %264 = vst.msk [vmem:[#allocation2 + $0x38] sm:$0xff] %vm256_vm0, %v231_v17  ;;  %v232_v20 = vld [vmem:[%s1911_s27 + $0x40] sm:$0xff] }
  0x18   : > { %263 = vst.msk [vmem:[#allocation2 + $0x30] sm:$0xff] %vm256_vm0, %v230_v18  ;;  %266 = vst.msk [vmem:[#allocation2 + $0x48] sm:$0xff] %vm256_vm0, %v233_v19  ;;  %v235_v21 = vld [vmem:[%s1911_s27 + $0x58] sm:$0xff]  ;;  %v234_v22 = vld [vmem:[%s1911_s27 + $0x50] sm:$0xff] }
  0x19   : > { %363 = vrot.lane.b32.xlu1 %v294_v5, %s1852_s24  ;;  %361 = vrot.lane.b32.xlu0 %v293_v6, %s1852_s24  ;;  %v300_v23 = vld [vmem:[%s1895_s23 + $0x58] sm:$0xff]  ;;  %v299_v24 = vld [vmem:[%s1895_s23 + $0x50] sm:$0xff]  ;;  %265 = vst.msk [vmem:[#allocation2 + $0x40] sm:$0xff] %vm256_vm0, %v232_v20  ;;  %268 = vst.msk [vmem:[#allocation2 + $0x58] sm:$0xff] %vm256_vm0, %v235_v21 }
  0x1a   : > { %267 = vst.msk [vmem:[#allocation2 + $0x50] sm:$0xff] %vm256_vm0, %v234_v22  ;;  %v237_v25 = vld [vmem:[%s1911_s27 + $0x68] sm:$0xff]  ;;  %v236_v26 = vld [vmem:[%s1911_s27 + $0x60] sm:$0xff]  ;;  %v239_v27 = vld [vmem:[%s1911_s27 + $0x78] sm:$0xff] }
  0x1b   : > { %270 = vst.msk [vmem:[#allocation2 + $0x68] sm:$0xff] %vm256_vm0, %v237_v25  ;;  %269 = vst.msk [vmem:[#allocation2 + $0x60] sm:$0xff] %vm256_vm0, %v236_v26  ;;  %v238_v28 = vld [vmem:[%s1911_s27 + $0x70] sm:$0xff]  ;;  %v241_v29 = vld [vmem:[%s1911_s27 + $0x88] sm:$0xff] }
  0x1c   : > { %272 = vst.msk [vmem:[#allocation2 + $0x78] sm:$0xff] %vm256_vm0, %v239_v27  ;;  %271 = vst.msk [vmem:[#allocation2 + $0x70] sm:$0xff] %vm256_vm0, %v238_v28  ;;  %v302_v30 = vld [vmem:[%s1895_s23 + $0x68] sm:$0xff]  ;;  %v301_v31 = vld [vmem:[%s1895_s23 + $0x60] sm:$0xff] }
  0x1d   : > { %367 = vrot.lane.b32.xlu1 %v296_v7, %s1852_s24  ;;  %365 = vrot.lane.b32.xlu0 %v295_v8, %s1852_s24  ;;  %274 = vst.msk [vmem:[#allocation2 + $0x88] sm:$0xff] %vm256_vm0, %v241_v29  ;;  %v240_v32 = vld [vmem:[%s1911_s27 + $0x80] sm:$0xff]  ;;  %v243_v33 = vld [vmem:[%s1911_s27 + $0x98] sm:$0xff] }
  0x1e   : > { %273 = vst.msk [vmem:[#allocation2 + $0x80] sm:$0xff] %vm256_vm0, %v240_v32  ;;  %v242_v34 = vld [vmem:[%s1911_s27 + $0x90] sm:$0xff]  ;;  %276 = vst.msk [vmem:[#allocation2 + $0x98] sm:$0xff] %vm256_vm0, %v243_v33  ;;  %v304_v35 = vld [vmem:[%s1895_s23 + $0x78] sm:$0xff] }
  0x1f   : > { %275 = vst.msk [vmem:[#allocation2 + $0x90] sm:$0xff] %vm256_vm0, %v242_v34  ;;  %v303_v36 = vld [vmem:[%s1895_s23 + $0x70] sm:$0xff]  ;;  %v245_v37 = vld [vmem:[%s1911_s27 + $0xa8] sm:$0xff]  ;;  %v244_v38 = vld [vmem:[%s1911_s27 + $0xa0] sm:$0xff] }
  0x20   : > { %278 = vst.msk [vmem:[#allocation2 + $0xa8] sm:$0xff] %vm256_vm0, %v245_v37  ;;  %v306_v39 = vld [vmem:[%s1895_s23 + $0x88] sm:$0xff]  ;;  %277 = vst.msk [vmem:[#allocation2 + $0xa0] sm:$0xff] %vm256_vm0, %v244_v38  ;;  %v305_v40 = vld [vmem:[%s1895_s23 + $0x80] sm:$0xff] }
  0x21   : > { %371 = vrot.lane.b32.xlu1 %v298_v10, %s1852_s24  ;;  %369 = vrot.lane.b32.xlu0 %v297_v11, %s1852_s24  ;;  %v247_v41 = vld [vmem:[%s1911_s27 + $0xb8] sm:$0xff]  ;;  %v246_v42 = vld [vmem:[%s1911_s27 + $0xb0] sm:$0xff] }
  0x22   : > { %280 = vst.msk [vmem:[#allocation2 + $0xb8] sm:$0xff] %vm256_vm0, %v247_v41  ;;  %279 = vst.msk [vmem:[#allocation2 + $0xb0] sm:$0xff] %vm256_vm0, %v246_v42  ;;  %v308_v43 = vld [vmem:[%s1895_s23 + $0x98] sm:$0xff]  ;;  %v307_v44 = vld [vmem:[%s1895_s23 + $0x90] sm:$0xff] }
  0x23   : > { %v249_v45 = vld [vmem:[%s1911_s27 + $0xc8] sm:$0xff]  ;;  %v248_v46 = vld [vmem:[%s1911_s27 + $0xc0] sm:$0xff]  ;;  %v251_v49 = vld [vmem:[%s1911_s27 + $0xd8] sm:$0xff] }
  0x24   : > { %282 = vst.msk [vmem:[#allocation2 + $0xc8] sm:$0xff] %vm256_vm0, %v249_v45  ;;  %v310_v47 = vld [vmem:[%s1895_s23 + $0xa8] sm:$0xff]  ;;  %281 = vst.msk [vmem:[#allocation2 + $0xc0] sm:$0xff] %vm256_vm0, %v248_v46  ;;  %v309_v48 = vld [vmem:[%s1895_s23 + $0xa0] sm:$0xff] }
  0x25   : > { %375 = vrot.lane.b32.xlu1 %v300_v23, %s1852_s24  ;;  %373 = vrot.lane.b32.xlu0 %v299_v24, %s1852_s24  ;;  %v250_v50 = vld [vmem:[%s1911_s27 + $0xd0] sm:$0xff]  ;;  %284 = vst.msk [vmem:[#allocation2 + $0xd8] sm:$0xff] %vm256_vm0, %v251_v49  ;;  %v312_v51 = vld [vmem:[%s1895_s23 + $0xb8] sm:$0xff] }
  0x26   : > { %283 = vst.msk [vmem:[#allocation2 + $0xd0] sm:$0xff] %vm256_vm0, %v250_v50  ;;  %v311_v52 = vld [vmem:[%s1895_s23 + $0xb0] sm:$0xff]  ;;  %v253_v53 = vld [vmem:[%s1911_s27 + $0xe8] sm:$0xff]  ;;  %v252_v54 = vld [vmem:[%s1911_s27 + $0xe0] sm:$0xff] }
  0x27   : > { %286 = vst.msk [vmem:[#allocation2 + $0xe8] sm:$0xff] %vm256_vm0, %v253_v53  ;;  %v314_v55 = vld [vmem:[%s1895_s23 + $0xc8] sm:$0xff]  ;;  %285 = vst.msk [vmem:[#allocation2 + $0xe0] sm:$0xff] %vm256_vm0, %v252_v54  ;;  %v313_v56 = vld [vmem:[%s1895_s23 + $0xc0] sm:$0xff] }
  0x28   : > { %v255_v57 = vld [vmem:[%s1911_s27 + $0xf8] sm:$0xff]  ;;  %v254_v58 = vld [vmem:[%s1911_s27 + $0xf0] sm:$0xff]  ;;  %v318_v61 = vld [vmem:[%s1895_s23 + $0xe8] sm:$0xff] }
  0x29   : > { %379 = vrot.lane.b32.xlu1 %v302_v30, %s1852_s24  ;;  %377 = vrot.lane.b32.xlu0 %v301_v31, %s1852_s24  ;;  %288 = vst.msk [vmem:[#allocation2 + $0xf8] sm:$0xff] %vm256_vm0, %v255_v57  ;;  %287 = vst.msk [vmem:[#allocation2 + $0xf0] sm:$0xff] %vm256_vm0, %v254_v58  ;;  %v316_v59 = vld [vmem:[%s1895_s23 + $0xd8] sm:$0xff]  ;;  %v315_v60 = vld [vmem:[%s1895_s23 + $0xd0] sm:$0xff] }
  0x2a   : > { %v317_v62 = vld [vmem:[%s1895_s23 + $0xe0] sm:$0xff]  ;;  %v320_v63 = vld [vmem:[%s1895_s23 + $0xf8] sm:$0xff]  ;;  %v319_v0 = vld [vmem:[%s1895_s23 + $0xf0] sm:$0xff] }
  0x2b   : > { %v2032_v1 = vld [vmem:[%s2361_s2 + $0x8] sm:$0xff]  }
  0x2c   : > { %1720 = vmatprep.subr.bf16.mxu1 %v2032_v1 }
  0x2d   : > { %383 = vrot.lane.b32.xlu1 %v304_v35, %s1852_s24  ;;  %381 = vrot.lane.b32.xlu0 %v303_v36, %s1852_s24 }
  0x31   : > { %387 = vrot.lane.b32.xlu1 %v306_v39, %s1852_s24  ;;  %385 = vrot.lane.b32.xlu0 %v305_v40, %s1852_s24 }
  0x35   : > { %391 = vrot.lane.b32.xlu1 %v308_v43, %s1852_s24  ;;  %389 = vrot.lane.b32.xlu0 %v307_v44, %s1852_s24 }
  0x39   : > { %395 = vrot.lane.b32.xlu1 %v310_v47, %s1852_s24  ;;  %393 = vrot.lane.b32.xlu0 %v309_v48, %s1852_s24 }
  0x3d   : > { %399 = vrot.lane.b32.xlu1 %v312_v51, %s1852_s24  ;;  %397 = vrot.lane.b32.xlu0 %v311_v52, %s1852_s24 }
  0x41   : > { %403 = vrot.lane.b32.xlu1 %v314_v55, %s1852_s24  ;;  %401 = vrot.lane.b32.xlu0 %v313_v56, %s1852_s24  ;;  %v1829_v56 = vld [vmem:[%s2361_s2 + $0x10] sm:$0xff]  }
  0x45   : > { %407 = vrot.lane.b32.xlu1 %v316_v59, %s1852_s24  ;;  %405 = vrot.lane.b32.xlu0 %v315_v60, %s1852_s24 }
  0x49   : > { %411 = vrot.lane.b32.xlu1 %v318_v61, %s1852_s24  ;;  %409 = vrot.lane.b32.xlu0 %v317_v62, %s1852_s24  ;;  %v1830_v62 = vld [vmem:[%s2361_s2 + $0x18] sm:$0xff]  }
  0x4d   : > { %415 = vrot.lane.b32.xlu1 %v320_v63, %s1852_s24  ;;  %413 = vrot.lane.b32.xlu0 %v319_v0, %s1852_s24 }
  0x83   : > { %v358_v2 = vpop.permute.xlu1 %357  ;;  %v354_v3 = vpop.permute.xlu0 %353 }
  0x84   : > { %452 = vst.msk [vmem:[#allocation2 + $0x10] sm:$0xff] %vm449_vm1, %v358_v2  ;;  %450 = vst.msk [vmem:[#allocation2] sm:$0xff] %vm449_vm1, %v354_v3 }
  0x87   : > { %v360_v4 = vpop.permute.xlu1 %359  ;;  %v356_v5 = vpop.permute.xlu0 %355 }
  0x88   : > { %453 = vst.msk [vmem:[#allocation2 + $0x18] sm:$0xff] %vm449_vm1, %v360_v4  ;;  %451 = vst.msk [vmem:[#allocation2 + $0x8] sm:$0xff] %vm449_vm1, %v356_v5  ;;  %v1831_v4 = vld [vmem:[%s2361_s2 + $0x20] sm:$0xff]  }
  0x8b   : > { %v364_v6 = vpop.permute.xlu1 %363  ;;  %v362_v7 = vpop.permute.xlu0 %361  ;;  %v482_v8 = vld [vmem:[#allocation2] sm:$0xff]  ;;  %v484_v12 = vld [vmem:[#allocation2 + $0x10] sm:$0xff] }
  0x8c   : > { %455 = vst.msk [vmem:[#allocation2 + $0x28] sm:$0xff] %vm449_vm1, %v364_v6  ;;  %454 = vst.msk [vmem:[#allocation2 + $0x20] sm:$0xff] %vm449_vm1, %v362_v7 }
  0x8f   : > { %v368_v9 = vpop.permute.xlu1 %367  ;;  %v366_v10 = vpop.permute.xlu0 %365  ;;  %v483_v11 = vld [vmem:[#allocation2 + $0x8] sm:$0xff]  ;;  %v485_v13 = vld [vmem:[#allocation2 + $0x18] sm:$0xff] }
  0x90   : > { %457 = vst.msk [vmem:[#allocation2 + $0x38] sm:$0xff] %vm449_vm1, %v368_v9  ;;  %456 = vst.msk [vmem:[#allocation2 + $0x30] sm:$0xff] %vm449_vm1, %v366_v10  ;;  %v514_v14 = vpack.c.bf16 %v483_v11, %v482_v8  ;;  %v515_v15 = vpack.c.bf16 %v485_v13, %v484_v12  ;;  %v1832_v10 = vld [vmem:[%s2361_s2 + $0x28] sm:$0xff]  }
  0x92   : > { %1688 = vmatprep.mubr.msk.bf16.mxu0 %vm575_vm2, %v514_v14 }
  0x93   : > { %v372_v16 = vpop.permute.xlu1 %371  ;;  %v370_v17 = vpop.permute.xlu0 %369  ;;  %1689 = vmatmul.mubr.msk.bf16.vlgmr.msra.gmra.mrb[0].mxu0 %vm575_vm2, %v515_v15  ;;  %v486_v18 = vld [vmem:[#allocation2 + $0x20] sm:$0xff]  ;;  %v487_v19 = vld [vmem:[#allocation2 + $0x28] sm:$0xff] }
  0x94   : > { %459 = vst.msk [vmem:[#allocation2 + $0x48] sm:$0xff] %vm449_vm1, %v372_v16  ;;  %458 = vst.msk [vmem:[#allocation2 + $0x40] sm:$0xff] %vm449_vm1, %v370_v17  ;;  %v516_v20 = vpack.c.bf16 %v487_v19, %v486_v18  ;;  %v1833_v16 = vld [vmem:[%s2361_s2 + $0x30] sm:$0xff]  }
  0x96   : > { %1692 = vmatprep.mubr.msk.bf16.mxu0 %vm575_vm2, %v516_v20 }
  0x97   : > { %v376_v21 = vpop.permute.xlu1 %375  ;;  %v374_v22 = vpop.permute.xlu0 %373  ;;  %v488_v23 = vld [vmem:[#allocation2 + $0x30] sm:$0xff]  ;;  %v489_v24 = vld [vmem:[#allocation2 + $0x38] sm:$0xff] }
  0x98   : > { %461 = vst.msk [vmem:[#allocation2 + $0x58] sm:$0xff] %vm449_vm1, %v376_v21  ;;  %460 = vst.msk [vmem:[#allocation2 + $0x50] sm:$0xff] %vm449_vm1, %v374_v22  ;;  %v517_v25 = vpack.c.bf16 %v489_v24, %v488_v23  ;;  %v1834_v23 = vld [vmem:[%s2361_s2 + $0x38] sm:$0xff]   ;;  %v1835_v24 = vld [vmem:[%s2361_s2 + $0x40] sm:$0xff]  }
  0x9b   : > { %v380_v26 = vpop.permute.xlu1 %379  ;;  %v378_v27 = vpop.permute.xlu0 %377  ;;  %1693 = vmatmul.mubr.msk.bf16.gmra.mrb[4].mxu0 %vm575_vm2, %v517_v25  ;;  %v490_v28 = vld [vmem:[#allocation2 + $0x40] sm:$0xff]  ;;  %v491_v29 = vld [vmem:[#allocation2 + $0x48] sm:$0xff] }
  0x9c   : > { %463 = vst.msk [vmem:[#allocation2 + $0x68] sm:$0xff] %vm449_vm1, %v380_v26  ;;  %462 = vst.msk [vmem:[#allocation2 + $0x60] sm:$0xff] %vm449_vm1, %v378_v27  ;;  %v518_v30 = vpack.c.bf16 %v491_v29, %v490_v28  ;;  %v1836_v25 = vld [vmem:[%s2361_s2 + $0x48] sm:$0xff]   ;;  %v1837_v26 = vld [vmem:[%s2361_s2 + $0x50] sm:$0xff]  }
  0x9d   : > { %1768 = vmatprep.subr.bf16.mxu0 %v1836_v25  ;;  %v1838_v27 = vld [vmem:[%s2361_s2 + $0x58] sm:$0xff]   ;;  %v1839_v28 = vld [vmem:[%s2361_s2 + $0x60] sm:$0xff]   ;;  %v1840_v29 = vld [vmem:[%s2361_s2 + $0x68] sm:$0xff]  }
  0x9e   : > { %1696 = vmatprep.mubr.msk.bf16.mxu0 %vm575_vm2, %v518_v30  ;;  %1769 = vmatpush3.bf16.msra.mxu0 %v1836_v25  ;;  %v1841_v30 = vld [vmem:[%s2361_s2 + $0x70] sm:$0xff]  }
  0x9f   : > { %v384_v31 = vpop.permute.xlu1 %383  ;;  %v382_v32 = vpop.permute.xlu0 %381  ;;  %v492_v33 = vld [vmem:[#allocation2 + $0x50] sm:$0xff]  ;;  %v493_v34 = vld [vmem:[#allocation2 + $0x58] sm:$0xff]  ;;  %1770 = vmatprep.subr.bf16.mxu0 %v1837_v26 }
  0xa0   : > { %465 = vst.msk [vmem:[#allocation2 + $0x78] sm:$0xff] %vm449_vm1, %v384_v31  ;;  %464 = vst.msk [vmem:[#allocation2 + $0x70] sm:$0xff] %vm449_vm1, %v382_v32  ;;  %v519_v35 = vpack.c.bf16 %v493_v34, %v492_v33  ;;  %v565_v31 = vlaneseq  ;;  %v2131_v34 = vld [vmem:[%s2362_s3] sm:$0xff] }
  0xa2   : > { %1771 = vmatpush3.bf16.msra.mxu0 %v1837_v26  ;;  %v2125_v32 = vshrl.u32 %v565_v31, 7 }
  0xa3   : > { %v388_v36 = vpop.permute.xlu1 %387  ;;  %v386_v37 = vpop.permute.xlu0 %385  ;;  %1697 = vmatmul.mubr.msk.bf16.gmra.mrb[8].mxu0 %vm575_vm2, %v519_v35  ;;  %v494_v38 = vld [vmem:[#allocation2 + $0x60] sm:$0xff]  ;;  %v495_v39 = vld [vmem:[#allocation2 + $0x68] sm:$0xff]  ;;  %1772 = vmatprep.subr.bf16.mxu0 %v1838_v27 }
  0xa4   : > { %467 = vst.msk [vmem:[#allocation2 + $0x88] sm:$0xff] %vm449_vm1, %v388_v36  ;;  %466 = vst.msk [vmem:[#allocation2 + $0x80] sm:$0xff] %vm449_vm1, %v386_v37  ;;  %v520_v40 = vpack.c.bf16 %v495_v39, %v494_v38  ;;  %v567_v33 = vsub.s32 0, %v2125_v32 }
  0xa6   : > { %1700 = vmatprep.mubr.msk.bf16.mxu0 %vm575_vm2, %v520_v40  ;;  %1773 = vmatpush3.bf16.msra.mxu0 %v1838_v27  ;;  %v2134_v35 = vrot.slane %v2131_v34, %v567_v33 }
  0xa7   : > { %v392_v41 = vpop.permute.xlu1 %391  ;;  %v390_v42 = vpop.permute.xlu0 %389  ;;  %v496_v43 = vld [vmem:[#allocation2 + $0x70] sm:$0xff]  ;;  %v497_v44 = vld [vmem:[#allocation2 + $0x78] sm:$0xff]  ;;  %1774 = vmatprep.subr.bf16.mxu0 %v1839_v28 }
  0xa8   : > { %469 = vst.msk [vmem:[#allocation2 + $0x98] sm:$0xff] %vm449_vm1, %v392_v41  ;;  %468 = vst.msk [vmem:[#allocation2 + $0x90] sm:$0xff] %vm449_vm1, %v390_v42  ;;  %v521_v45 = vpack.c.bf16 %v497_v44, %v496_v43 }
  0xaa   : > { %1775 = vmatpush3.bf16.msra.mxu0 %v1839_v28 }
  0xab   : > { %v396_v46 = vpop.permute.xlu1 %395  ;;  %v394_v47 = vpop.permute.xlu0 %393  ;;  %1701 = vmatmul.mubr.msk.bf16.gmra.mrb[12].mxu0 %vm575_vm2, %v521_v45  ;;  %v498_v48 = vld [vmem:[#allocation2 + $0x80] sm:$0xff]  ;;  %v499_v49 = vld [vmem:[#allocation2 + $0x88] sm:$0xff]  ;;  %1776 = vmatprep.subr.bf16.mxu0 %v1840_v29 }
  0xac   : > { %471 = vst.msk [vmem:[#allocation2 + $0xa8] sm:$0xff] %vm449_vm1, %v396_v46  ;;  %470 = vst.msk [vmem:[#allocation2 + $0xa0] sm:$0xff] %vm449_vm1, %v394_v47  ;;  %v522_v50 = vpack.c.bf16 %v499_v49, %v498_v48 }
  0xae   : > { %1704 = vmatprep.mubr.msk.bf16.mxu1 %vm575_vm2, %v522_v50  ;;  %1777 = vmatpush3.bf16.msra.mxu0 %v1840_v29 }
  0xaf   : > { %v400_v51 = vpop.permute.xlu1 %399  ;;  %v398_v52 = vpop.permute.xlu0 %397  ;;  %v500_v53 = vld [vmem:[#allocation2 + $0x90] sm:$0xff]  ;;  %v501_v54 = vld [vmem:[#allocation2 + $0x98] sm:$0xff]  ;;  %1778 = vmatprep.subr.bf16.mxu0 %v1841_v30 }
  0xb0   : > { %473 = vst.msk [vmem:[#allocation2 + $0xb8] sm:$0xff] %vm449_vm1, %v400_v51  ;;  %472 = vst.msk [vmem:[#allocation2 + $0xb0] sm:$0xff] %vm449_vm1, %v398_v52  ;;  %v523_v55 = vpack.c.bf16 %v501_v54, %v500_v53 }
  0xb2   : > { %1705 = vmatmul.mubr.msk.bf16.vlgmr.msra.gmra.mrb[0].mxu1 %vm575_vm2, %v523_v55  ;;  %1779 = vmatpush3.bf16.msra.mxu0 %v1841_v30 }
  0xb3   : > { %v404_v57 = vpop.permute.xlu1 %403  ;;  %v402_v58 = vpop.permute.xlu0 %401  ;;  %v502_v59 = vld [vmem:[#allocation2 + $0xa0] sm:$0xff]  ;;  %v503_v60 = vld [vmem:[#allocation2 + $0xa8] sm:$0xff]  ;;  %1721 = vmatpush3.bf16.msra.mxu1 %v2032_v1 }
  0xb4   : > { %475 = vst.msk [vmem:[#allocation2 + $0xc8] sm:$0xff] %vm449_vm1, %v404_v57  ;;  %474 = vst.msk [vmem:[#allocation2 + $0xc0] sm:$0xff] %vm449_vm1, %v402_v58  ;;  %v524_v61 = vpack.c.bf16 %v503_v60, %v502_v59  ;;  %1722 = vmatprep.subr.bf16.mxu1 %v1829_v56 }
  0xb6   : > { %1708 = vmatprep.mubr.msk.bf16.mxu1 %vm575_vm2, %v524_v61 }
  0xb7   : > { %v408_v63 = vpop.permute.xlu1 %407  ;;  %v406_v0 = vpop.permute.xlu0 %405  ;;  %v504_v2 = vld [vmem:[#allocation2 + $0xb0] sm:$0xff]  ;;  %v505_v3 = vld [vmem:[#allocation2 + $0xb8] sm:$0xff]  ;;  %1723 = vmatpush3.bf16.msra.mxu1 %v1829_v56 }
  0xb8   : > { %477 = vst.msk [vmem:[#allocation2 + $0xd8] sm:$0xff] %vm449_vm1, %v408_v63  ;;  %476 = vst.msk [vmem:[#allocation2 + $0xd0] sm:$0xff] %vm449_vm1, %v406_v0  ;;  %v525_v1 = vpack.c.bf16 %v505_v3, %v504_v2  ;;  %1724 = vmatprep.subr.bf16.mxu1 %v1830_v62 }
  0xba   : > { %1709 = vmatmul.mubr.msk.bf16.gmra.mrb[4].mxu1 %vm575_vm2, %v525_v1 }
  0xbb   : > { %v412_v5 = vpop.permute.xlu1 %411  ;;  %v410_v6 = vpop.permute.xlu0 %409  ;;  %v506_v7 = vld [vmem:[#allocation2 + $0xc0] sm:$0xff]  ;;  %v507_v8 = vld [vmem:[#allocation2 + $0xc8] sm:$0xff]  ;;  %1725 = vmatpush3.bf16.msra.mxu1 %v1830_v62 }
  0xbc   : > { %479 = vst.msk [vmem:[#allocation2 + $0xe8] sm:$0xff] %vm449_vm1, %v412_v5  ;;  %478 = vst.msk [vmem:[#allocation2 + $0xe0] sm:$0xff] %vm449_vm1, %v410_v6  ;;  %v526_v9 = vpack.c.bf16 %v507_v8, %v506_v7  ;;  %1726 = vmatprep.subr.bf16.mxu1 %v1831_v4 }
  0xbe   : > { %1712 = vmatprep.mubr.msk.bf16.mxu1 %vm575_vm2, %v526_v9 }
  0xbf   : > { %v416_v11 = vpop.permute.xlu1 %415  ;;  %v414_v12 = vpop.permute.xlu0 %413  ;;  %v508_v13 = vld [vmem:[#allocation2 + $0xd0] sm:$0xff]  ;;  %v509_v14 = vld [vmem:[#allocation2 + $0xd8] sm:$0xff]  ;;  %1727 = vmatpush3.bf16.msra.mxu1 %v1831_v4 }
  0xc0   : > { %481 = vst.msk [vmem:[#allocation2 + $0xf8] sm:$0xff] %vm449_vm1, %v416_v11  ;;  %480 = vst.msk [vmem:[#allocation2 + $0xf0] sm:$0xff] %vm449_vm1, %v414_v12  ;;  %v527_v15 = vpack.c.bf16 %v509_v14, %v508_v13  ;;  %1728 = vmatprep.subr.bf16.mxu1 %v1832_v10 }
  0xc2   : > { %1713 = vmatmul.mubr.msk.bf16.gmra.mrb[8].mxu1 %vm575_vm2, %v527_v15 }
  0xc3   : > { %v510_v17 = vld [vmem:[#allocation2 + $0xe0] sm:$0xff]  ;;  %v511_v18 = vld [vmem:[#allocation2 + $0xe8] sm:$0xff]  ;;  %1729 = vmatpush3.bf16.msra.mxu1 %v1832_v10 }
  0xc4   : > { %v528_v19 = vpack.c.bf16 %v511_v18, %v510_v17  ;;  %1730 = vmatprep.subr.bf16.mxu1 %v1833_v16 }
  0xc6   : > { %1716 = vmatprep.mubr.msk.bf16.mxu1 %vm575_vm2, %v528_v19 }
  0xc7   : > { %v512_v20 = vld [vmem:[#allocation2 + $0xf0] sm:$0xff]  ;;  %v513_v21 = vld [vmem:[#allocation2 + $0xf8] sm:$0xff]  ;;  %1731 = vmatpush3.bf16.msra.mxu1 %v1833_v16 }
  0xc8   : > { %v529_v22 = vpack.c.bf16 %v513_v21, %v512_v20  ;;  %1732 = vmatprep.subr.bf16.mxu1 %v1834_v23 }
  0xca   : > { %1717 = vmatmul.mubr.msk.bf16.gmra.mrb[12].mxu1 %vm575_vm2, %v529_v22 }
  0xcb   : > { %1733 = vmatpush3.bf16.msra.mxu1 %v1834_v23 }
  0xcc   : > { %1734 = vmatprep.subr.bf16.mxu1 %v1835_v24 }
  0xcf   : > { %1735 = vmatpush3.bf16.msra.mxu1 %v1835_v24 }
 0x166   : > { %v1690_v36 = vpop.f32.mrb[0].mxu0 }
 0x167   : > { %v667_v37 = vadd.f32 %v1690_v36, %v2134_v35  ;;  %v658_v38 = vpop.f32.mrb[1].mxu0 }
 0x168   : > { %v659_v39 = vadd.f32 %v658_v38, %v2134_v35  ;;  %v1691_v40 = vpop.f32.mrb[2].mxu0 }
 0x169   : > { %v670_v41 = vadd.f32 %v1691_v40, %v2134_v35  ;;  %v661_v42 = vpop.f32.mrb[3].mxu0  ;;  %v787_v44 = vmax.f32 %v667_v37, 0.0 }
 0x16a   : > { %v662_v43 = vadd.f32 %v661_v42, %v2134_v35  ;;  %v785_v46 = vmax.f32 %v659_v39, 0.0 }
 0x16b   : > { %v788_v45 = vmax.f32 %v670_v41, 0.0 }
 0x16c   : > { %v786_v47 = vmax.f32 %v662_v43, 0.0 }
 0x16d   : > { %v818_v48 = vpack.c.bf16 %v788_v45, %v787_v44 }
 0x16e   : > { %v817_v49 = vpack.c.bf16 %v786_v47, %v785_v46  ;;  %v1694_v50 = vpop.f32.mrb[4].mxu0 }
 0x16f   : > { %v683_v51 = vadd.f32 %v1694_v50, %v2134_v35  ;;  %v674_v52 = vpop.f32.mrb[5].mxu0 }
 0x170   : > { %v675_v53 = vadd.f32 %v674_v52, %v2134_v35  ;;  %v1695_v54 = vpop.f32.mrb[6].mxu0  ;;  %1736 = vmatprep.mubr.bf16.mxu1 %v817_v49 }
 0x171   : > { %v791_v55 = vmax.f32 %v683_v51, 0.0  ;;  %v686_v56 = vadd.f32 %v1695_v54, %v2134_v35  ;;  %v677_v57 = vpop.f32.mrb[7].mxu0  ;;  %1737 = vmatmul.mubr.bf16.vlgmr.msra.gmra.mrb[16].mxu1 %v818_v48 }
 0x172   : > { %v678_v58 = vadd.f32 %v677_v57, %v2134_v35  ;;  %v789_v60 = vmax.f32 %v675_v53, 0.0 }
 0x173   : > { %v792_v59 = vmax.f32 %v686_v56, 0.0 }
 0x174   : > { %v790_v61 = vmax.f32 %v678_v58, 0.0 }
 0x175   : > { %v820_v62 = vpack.c.bf16 %v792_v59, %v791_v55 }
 0x176   : > { %v819_v63 = vpack.c.bf16 %v790_v61, %v789_v60  ;;  %v1698_v0 = vpop.f32.mrb[8].mxu0 }
 0x177   : > { %v699_v2 = vadd.f32 %v1698_v0, %v2134_v35  ;;  %v690_v3 = vpop.f32.mrb[9].mxu0 }
 0x178   : > { %v691_v1 = vadd.f32 %v690_v3, %v2134_v35  ;;  %v1699_v4 = vpop.f32.mrb[10].mxu0  ;;  %1740 = vmatprep.mubr.bf16.mxu1 %v819_v63 }
 0x179   : > { %v795_v5 = vmax.f32 %v699_v2, 0.0  ;;  %v702_v6 = vadd.f32 %v1699_v4, %v2134_v35  ;;  %v693_v7 = vpop.f32.mrb[11].mxu0  ;;  %1741 = vmatmul.mubr.bf16.gmra.mrb[20].mxu1 %v820_v62 }
 0x17a   : > { %v694_v8 = vadd.f32 %v693_v7, %v2134_v35  ;;  %v793_v10 = vmax.f32 %v691_v1, 0.0 }
 0x17b   : > { %v796_v9 = vmax.f32 %v702_v6, 0.0 }
 0x17c   : > { %v794_v11 = vmax.f32 %v694_v8, 0.0 }
 0x17d   : > { %v822_v12 = vpack.c.bf16 %v796_v9, %v795_v5 }
 0x17e   : > { %v821_v13 = vpack.c.bf16 %v794_v11, %v793_v10  ;;  %v1702_v14 = vpop.f32.mrb[12].mxu0 }
 0x17f   : > { %v715_v15 = vadd.f32 %v1702_v14, %v2134_v35  ;;  %v706_v16 = vpop.f32.mrb[13].mxu0 }
 0x180   : > { %v707_v17 = vadd.f32 %v706_v16, %v2134_v35  ;;  %v1703_v18 = vpop.f32.mrb[14].mxu0  ;;  %1744 = vmatprep.mubr.bf16.mxu1 %v821_v13 }
 0x181   : > { %v799_v19 = vmax.f32 %v715_v15, 0.0  ;;  %v718_v20 = vadd.f32 %v1703_v18, %v2134_v35  ;;  %v709_v21 = vpop.f32.mrb[15].mxu0  ;;  %1745 = vmatmul.mubr.bf16.gmra.mrb[24].mxu1 %v822_v12 }
 0x182   : > { %v710_v22 = vadd.f32 %v709_v21, %v2134_v35  ;;  %v797_v24 = vmax.f32 %v707_v17, 0.0 }
 0x183   : > { %v800_v23 = vmax.f32 %v718_v20, 0.0 }
 0x184   : > { %v798_v25 = vmax.f32 %v710_v22, 0.0 }
 0x185   : > { %v824_v26 = vpack.c.bf16 %v800_v23, %v799_v19  ;;  %v1706_v27 = vpop.f32.mrb[0].mxu1  ;;  %v1842_v23 = vld [vmem:[%s2361_s2 + $0x78] sm:$0xff]  }
 0x186   : > { %v823_v28 = vpack.c.bf16 %v798_v25, %v797_v24  ;;  %v731_v29 = vadd.f32 %v1706_v27, %v2134_v35  ;;  %v722_v30 = vpop.f32.mrb[1].mxu1  ;;  %1780 = vmatprep.subr.bf16.mxu0 %v1842_v23  ;;  %v1843_v24 = vld [vmem:[%s2361_s2 + $0x80] sm:$0xff]  }
 0x187   : > { %v723_v31 = vadd.f32 %v722_v30, %v2134_v35  ;;  %v1707_v33 = vpop.f32.mrb[2].mxu1  ;;  %1781 = vmatpush3.bf16.msra.mxu0 %v1842_v23 }
 0x188   : > { %v803_v36 = vmax.f32 %v731_v29, 0.0  ;;  %v734_v37 = vadd.f32 %v1707_v33, %v2134_v35  ;;  %v725_v38 = vpop.f32.mrb[3].mxu1  ;;  %1748 = vmatprep.mubr.bf16.mxu1 %v823_v28  ;;  %1782 = vmatprep.subr.bf16.mxu0 %v1843_v24 }
 0x189   : > { %v801_v39 = vmax.f32 %v723_v31, 0.0  ;;  %v726_v40 = vadd.f32 %v725_v38, %v2134_v35  ;;  %1749 = vmatmul.mubr.bf16.gmra.mrb[28].mxu1 %v824_v26 }
 0x18a   : > { %v804_v41 = vmax.f32 %v734_v37, 0.0 }
 0x18b   : > { %v802_v42 = vmax.f32 %v726_v40, 0.0  ;;  %1783 = vmatpush3.bf16.msra.mxu0 %v1843_v24 }
 0x18c   : > { %v826_v43 = vpack.c.bf16 %v804_v41, %v803_v36 }
 0x18d   : > { %v825_v44 = vpack.c.bf16 %v802_v42, %v801_v39  ;;  %v1710_v45 = vpop.f32.mrb[4].mxu1 }
 0x18e   : > { %v747_v46 = vadd.f32 %v1710_v45, %v2134_v35  ;;  %v738_v47 = vpop.f32.mrb[5].mxu1 }
 0x18f   : > { %v739_v48 = vadd.f32 %v738_v47, %v2134_v35  ;;  %v1711_v49 = vpop.f32.mrb[6].mxu1  ;;  %1752 = vmatprep.mubr.bf16.mxu1 %v825_v44 }
 0x190   : > { %v807_v50 = vmax.f32 %v747_v46, 0.0  ;;  %v750_v51 = vadd.f32 %v1711_v49, %v2134_v35  ;;  %v741_v52 = vpop.f32.mrb[7].mxu1 }
 0x191   : > { %v805_v53 = vmax.f32 %v739_v48, 0.0  ;;  %v742_v54 = vadd.f32 %v741_v52, %v2134_v35  ;;  %1753 = vmatmul.mubr.bf16.gmra.mrb[32].mxu1 %v826_v43 }
 0x192   : > { %v808_v55 = vmax.f32 %v750_v51, 0.0 }
 0x193   : > { %v806_v56 = vmax.f32 %v742_v54, 0.0 }
 0x194   : > { %v828_v57 = vpack.c.bf16 %v808_v55, %v807_v50 }
 0x195   : > { %v827_v58 = vpack.c.bf16 %v806_v56, %v805_v53  ;;  %v1714_v59 = vpop.f32.mrb[8].mxu1 }
 0x196   : > { %v763_v60 = vadd.f32 %v1714_v59, %v2134_v35  ;;  %v754_v61 = vpop.f32.mrb[9].mxu1 }
 0x197   : > { %v755_v62 = vadd.f32 %v754_v61, %v2134_v35  ;;  %v1715_v63 = vpop.f32.mrb[10].mxu1  ;;  %1756 = vmatprep.mubr.bf16.mxu1 %v827_v58 }
 0x198   : > { %v811_v0 = vmax.f32 %v763_v60, 0.0  ;;  %v766_v2 = vadd.f32 %v1715_v63, %v2134_v35  ;;  %v757_v3 = vpop.f32.mrb[11].mxu1 }
 0x199   : > { %v809_v1 = vmax.f32 %v755_v62, 0.0  ;;  %v758_v4 = vadd.f32 %v757_v3, %v2134_v35  ;;  %1757 = vmatmul.mubr.bf16.gmra.mrb[36].mxu1 %v828_v57 }
 0x19a   : > { %v812_v5 = vmax.f32 %v766_v2, 0.0 }
 0x19b   : > { %v810_v6 = vmax.f32 %v758_v4, 0.0 }
 0x19c   : > { %v830_v7 = vpack.c.bf16 %v812_v5, %v811_v0 }
 0x19d   : > { %v829_v8 = vpack.c.bf16 %v810_v6, %v809_v1  ;;  %v1718_v9 = vpop.f32.mrb[12].mxu1 }
 0x19e   : > { %v779_v10 = vadd.f32 %v1718_v9, %v2134_v35  ;;  %v770_v11 = vpop.f32.mrb[13].mxu1 }
 0x19f   : > { %v771_v12 = vadd.f32 %v770_v11, %v2134_v35  ;;  %v1719_v13 = vpop.f32.mrb[14].mxu1  ;;  %1760 = vmatprep.mubr.bf16.mxu1 %v829_v8 }
 0x1a0   : > { %v815_v14 = vmax.f32 %v779_v10, 0.0  ;;  %v782_v15 = vadd.f32 %v1719_v13, %v2134_v35  ;;  %v773_v16 = vpop.f32.mrb[15].mxu1 }
 0x1a1   : > { %v813_v17 = vmax.f32 %v771_v12, 0.0  ;;  %v774_v18 = vadd.f32 %v773_v16, %v2134_v35  ;;  %1761 = vmatmul.mubr.bf16.gmra.mrb[40].mxu1 %v830_v7  ;;  %v835_v35 = vsub.s32 1, %v2125_v32 }
 0x1a2   : > { %v816_v19 = vmax.f32 %v782_v15, 0.0 }
 0x1a3   : > { %v814_v20 = vmax.f32 %v774_v18, 0.0  ;;  %v2176_v25 = vrot.slane %v2131_v34, %v835_v35 }
 0x1a4   : > { %v832_v21 = vpack.c.bf16 %v816_v19, %v815_v14 }
 0x1a5   : > { %v831_v22 = vpack.c.bf16 %v814_v20, %v813_v17 }
 0x1a7   : > { %1764 = vmatprep.mubr.bf16.mxu1 %v831_v22 }
 0x1a9   : > { %1765 = vmatmul.mubr.bf16.gmra.mrb[44].mxu1 %v832_v21 }
 0x244   : > { %v1738_v26 = vpop.f32.mrb[16].mxu1 }
 0x245   : > { %v928_v27 = vadd.f32 %v1738_v26, %v2176_v25  ;;  %v919_v28 = vpop.f32.mrb[17].mxu1 }
 0x246   : > { %v920_v29 = vadd.f32 %v919_v28, %v2176_v25  ;;  %v1739_v30 = vpop.f32.mrb[18].mxu1 }
 0x247   : > { %v931_v31 = vadd.f32 %v1739_v30, %v2176_v25  ;;  %v922_v33 = vpop.f32.mrb[19].mxu1  ;;  %v1048_v37 = vmax.f32 %v928_v27, 0.0 }
 0x248   : > { %v923_v36 = vadd.f32 %v922_v33, %v2176_v25  ;;  %v1046_v39 = vmax.f32 %v920_v29, 0.0 }
 0x249   : > { %v1049_v38 = vmax.f32 %v931_v31, 0.0 }
 0x24a   : > { %v1047_v40 = vmax.f32 %v923_v36, 0.0 }
 0x24b   : > { %v1079_v41 = vpack.c.bf16 %v1049_v38, %v1048_v37 }
 0x24c   : > { %v1078_v42 = vpack.c.bf16 %v1047_v40, %v1046_v39  ;;  %v1742_v43 = vpop.f32.mrb[20].mxu1 }
 0x24d   : > { %v944_v44 = vadd.f32 %v1742_v43, %v2176_v25  ;;  %v935_v45 = vpop.f32.mrb[21].mxu1 }
 0x24e   : > { %v936_v46 = vadd.f32 %v935_v45, %v2176_v25  ;;  %v1743_v47 = vpop.f32.mrb[22].mxu1  ;;  %1784 = vmatprep.mubr.bf16.mxu0 %v1078_v42 }
 0x24f   : > { %v947_v48 = vadd.f32 %v1743_v47, %v2176_v25  ;;  %v938_v49 = vpop.f32.mrb[23].mxu1  ;;  %1785 = vmatmul.mubr.bf16.vlgmr.msra.gmra.mrb[16].mxu0 %v1079_v41  ;;  %v1052_v51 = vmax.f32 %v944_v44, 0.0 }
 0x250   : > { %v939_v50 = vadd.f32 %v938_v49, %v2176_v25  ;;  %v1050_v53 = vmax.f32 %v936_v46, 0.0 }
 0x251   : > { %v1053_v52 = vmax.f32 %v947_v48, 0.0 }
 0x252   : > { %v1051_v54 = vmax.f32 %v939_v50, 0.0 }
 0x253   : > { %v1081_v55 = vpack.c.bf16 %v1053_v52, %v1052_v51 }
 0x254   : > { %v1080_v56 = vpack.c.bf16 %v1051_v54, %v1050_v53  ;;  %v1746_v57 = vpop.f32.mrb[24].mxu1 }
 0x255   : > { %v960_v58 = vadd.f32 %v1746_v57, %v2176_v25  ;;  %v951_v59 = vpop.f32.mrb[25].mxu1 }
 0x256   : > { %v952_v60 = vadd.f32 %v951_v59, %v2176_v25  ;;  %v1747_v61 = vpop.f32.mrb[26].mxu1  ;;  %1788 = vmatprep.mubr.bf16.mxu0 %v1080_v56 }
 0x257   : > { %v963_v62 = vadd.f32 %v1747_v61, %v2176_v25  ;;  %v954_v63 = vpop.f32.mrb[27].mxu1  ;;  %1789 = vmatmul.mubr.bf16.gmra.mrb[20].mxu0 %v1081_v55  ;;  %v1056_v2 = vmax.f32 %v960_v58, 0.0 }
 0x258   : > { %v955_v0 = vadd.f32 %v954_v63, %v2176_v25  ;;  %v1054_v1 = vmax.f32 %v952_v60, 0.0 }
 0x259   : > { %v1057_v3 = vmax.f32 %v963_v62, 0.0 }
 0x25a   : > { %v1055_v4 = vmax.f32 %v955_v0, 0.0 }
 0x25b   : > { %v1083_v5 = vpack.c.bf16 %v1057_v3, %v1056_v2 }
 0x25c   : > { %v1082_v6 = vpack.c.bf16 %v1055_v4, %v1054_v1  ;;  %v1750_v7 = vpop.f32.mrb[28].mxu1 }
 0x25d   : > { %v976_v8 = vadd.f32 %v1750_v7, %v2176_v25  ;;  %v967_v9 = vpop.f32.mrb[29].mxu1 }
 0x25e   : > { %v968_v10 = vadd.f32 %v967_v9, %v2176_v25  ;;  %v1751_v11 = vpop.f32.mrb[30].mxu1  ;;  %1792 = vmatprep.mubr.bf16.mxu0 %v1082_v6 }
 0x25f   : > { %v979_v12 = vadd.f32 %v1751_v11, %v2176_v25  ;;  %v970_v13 = vpop.f32.mrb[31].mxu1  ;;  %1793 = vmatmul.mubr.bf16.gmra.mrb[24].mxu0 %v1083_v5  ;;  %v1060_v15 = vmax.f32 %v976_v8, 0.0 }
 0x260   : > { %v971_v14 = vadd.f32 %v970_v13, %v2176_v25  ;;  %v1058_v17 = vmax.f32 %v968_v10, 0.0 }
 0x261   : > { %v1061_v16 = vmax.f32 %v979_v12, 0.0 }
 0x262   : > { %v1059_v18 = vmax.f32 %v971_v14, 0.0 }
 0x263   : > { %v1085_v19 = vpack.c.bf16 %v1061_v16, %v1060_v15  ;;  %v1096_v16 = vsub.s32 2, %v2125_v32 }
 0x264   : > { %v1084_v20 = vpack.c.bf16 %v1059_v18, %v1058_v17  ;;  %v1754_v21 = vpop.f32.mrb[32].mxu1  ;;  %v1341_v18 = vsub.s32 3, %v2125_v32 }
 0x265   : > { %v992_v22 = vadd.f32 %v1754_v21, %v2176_v25  ;;  %v983_v23 = vpop.f32.mrb[33].mxu1  ;;  %v2212_v17 = vrot.slane %v2131_v34, %v1096_v16 }
 0x266   : > { %v984_v24 = vadd.f32 %v983_v23, %v2176_v25  ;;  %v1755_v35 = vpop.f32.mrb[34].mxu1  ;;  %1796 = vmatprep.mubr.bf16.mxu0 %v1084_v20 }
 0x267   : > { %v995_v26 = vadd.f32 %v1755_v35, %v2176_v25  ;;  %v986_v27 = vpop.f32.mrb[35].mxu1  ;;  %1797 = vmatmul.mubr.bf16.gmra.mrb[28].mxu0 %v1085_v19  ;;  %v1064_v29 = vmax.f32 %v992_v22, 0.0 }
 0x268   : > { %v987_v28 = vadd.f32 %v986_v27, %v2176_v25  ;;  %v1062_v31 = vmax.f32 %v984_v24, 0.0 }
 0x269   : > { %v1065_v30 = vmax.f32 %v995_v26, 0.0 }
 0x26a   : > { %v1063_v33 = vmax.f32 %v987_v28, 0.0 }
 0x26b   : > { %v1087_v36 = vpack.c.bf16 %v1065_v30, %v1064_v29 }
 0x26c   : > { %v1086_v37 = vpack.c.bf16 %v1063_v33, %v1062_v31  ;;  %v1758_v38 = vpop.f32.mrb[36].mxu1 }
 0x26d   : > { %v1008_v39 = vadd.f32 %v1758_v38, %v2176_v25  ;;  %v999_v40 = vpop.f32.mrb[37].mxu1 }
 0x26e   : > { %v1000_v41 = vadd.f32 %v999_v40, %v2176_v25  ;;  %v1759_v42 = vpop.f32.mrb[38].mxu1  ;;  %1800 = vmatprep.mubr.bf16.mxu0 %v1086_v37 }
 0x26f   : > { %v1011_v43 = vadd.f32 %v1759_v42, %v2176_v25  ;;  %v1002_v44 = vpop.f32.mrb[39].mxu1  ;;  %1801 = vmatmul.mubr.bf16.gmra.mrb[32].mxu0 %v1087_v36  ;;  %v1068_v46 = vmax.f32 %v1008_v39, 0.0 }
 0x270   : > { %v1003_v45 = vadd.f32 %v1002_v44, %v2176_v25  ;;  %v1066_v48 = vmax.f32 %v1000_v41, 0.0 }
 0x271   : > { %v1069_v47 = vmax.f32 %v1011_v43, 0.0 }
 0x272   : > { %v1067_v49 = vmax.f32 %v1003_v45, 0.0 }
 0x273   : > { %v1089_v50 = vpack.c.bf16 %v1069_v47, %v1068_v46 }
 0x274   : > { %v1088_v51 = vpack.c.bf16 %v1067_v49, %v1066_v48  ;;  %v1762_v52 = vpop.f32.mrb[40].mxu1 }
 0x275   : > { %v1024_v53 = vadd.f32 %v1762_v52, %v2176_v25  ;;  %v1015_v54 = vpop.f32.mrb[41].mxu1 }
 0x276   : > { %v1016_v55 = vadd.f32 %v1015_v54, %v2176_v25  ;;  %v1763_v56 = vpop.f32.mrb[42].mxu1  ;;  %1804 = vmatprep.mubr.bf16.mxu0 %v1088_v51 }
 0x277   : > { %v1027_v57 = vadd.f32 %v1763_v56, %v2176_v25  ;;  %v1018_v58 = vpop.f32.mrb[43].mxu1  ;;  %1805 = vmatmul.mubr.bf16.gmra.mrb[36].mxu0 %v1089_v50  ;;  %v1072_v60 = vmax.f32 %v1024_v53, 0.0 }
 0x278   : > { %v1019_v59 = vadd.f32 %v1018_v58, %v2176_v25  ;;  %v1070_v62 = vmax.f32 %v1016_v55, 0.0 }
 0x279   : > { %v1073_v61 = vmax.f32 %v1027_v57, 0.0 }
 0x27a   : > { %v1071_v63 = vmax.f32 %v1019_v59, 0.0 }
 0x27b   : > { %v1091_v0 = vpack.c.bf16 %v1073_v61, %v1072_v60 }
 0x27c   : > { %v1090_v2 = vpack.c.bf16 %v1071_v63, %v1070_v62  ;;  %v1766_v3 = vpop.f32.mrb[44].mxu1 }
 0x27d   : > { %v1040_v1 = vadd.f32 %v1766_v3, %v2176_v25  ;;  %v1031_v4 = vpop.f32.mrb[45].mxu1 }
 0x27e   : > { %v1032_v5 = vadd.f32 %v1031_v4, %v2176_v25  ;;  %v1767_v6 = vpop.f32.mrb[46].mxu1  ;;  %1808 = vmatprep.mubr.bf16.mxu0 %v1090_v2 }
 0x27f   : > { %v1043_v7 = vadd.f32 %v1767_v6, %v2176_v25  ;;  %v1034_v8 = vpop.f32.mrb[47].mxu1  ;;  %1809 = vmatmul.mubr.bf16.gmra.mrb[40].mxu0 %v1091_v0  ;;  %v1076_v10 = vmax.f32 %v1040_v1, 0.0 }
 0x280   : > { %v1035_v9 = vadd.f32 %v1034_v8, %v2176_v25  ;;  %v1074_v12 = vmax.f32 %v1032_v5, 0.0  ;;  %v2217_v25 = vrot.slane %v2131_v34, %v1341_v18 }
 0x281   : > { %v1077_v11 = vmax.f32 %v1043_v7, 0.0 }
 0x282   : > { %v1075_v13 = vmax.f32 %v1035_v9, 0.0 }
 0x283   : > { %v1093_v14 = vpack.c.bf16 %v1077_v11, %v1076_v10 }
 0x284   : > { %v1092_v15 = vpack.c.bf16 %v1075_v13, %v1074_v12 }
 0x286   : > { %1812 = vmatprep.mubr.bf16.mxu0 %v1092_v15 }
 0x287   : > { %1813 = vmatmul.mubr.bf16.gmra.mrb[44].mxu0 %v1093_v14 }
 0x322   : > { %v1786_v19 = vpop.f32.mrb[16].mxu0 }
 0x323   : > { %v1189_v20 = vadd.f32 %v1786_v19, %v2212_v17  ;;  %v1180_v21 = vpop.f32.mrb[17].mxu0 }
 0x324   : > { %v1181_v22 = vadd.f32 %v1180_v21, %v2212_v17  ;;  %v1787_v23 = vpop.f32.mrb[18].mxu0 }
 0x325   : > { %v1309_v24 = vmax.f32 %v1189_v20, 0.0  ;;  %v1183_v35 = vpop.f32.mrb[19].mxu0  ;;  %v1192_v28 = vadd.f32 %v1787_v23, %v2212_v17 }
 0x326   : > { %v1184_v26 = vadd.f32 %v1183_v35, %v2212_v17  ;;  %v1307_v27 = vmax.f32 %v1181_v22, 0.0 }
 0x327   : > { %v1345_v29 = vmul.f32 %v2217_v25, %v1309_v24  ;;  %v1310_v36 = vmax.f32 %v1192_v28, 0.0 }
 0x328   : > { %v1308_v30 = vmax.f32 %v1184_v26, 0.0  ;;  %v1343_v39 = vmul.f32 %v2217_v25, %v1307_v27 }
 0x329   : > { %1379 = vadd.xlane.f32.xlu0 %v1345_v29  ;;  %v1346_v49 = vmul.f32 %v2217_v25, %v1310_v36 }
 0x32a   : > { %v1790_v31 = vpop.f32.mrb[20].mxu0  ;;  %v1344_v33 = vmul.f32 %v2217_v25, %v1308_v30 }
 0x32b   : > { %v1205_v37 = vadd.f32 %v1790_v31, %v2212_v17  ;;  %v1196_v38 = vpop.f32.mrb[21].mxu0 }
 0x32c   : > { %v1197_v40 = vadd.f32 %v1196_v38, %v2212_v17  ;;  %v1791_v41 = vpop.f32.mrb[22].mxu0  ;;  %1377 = vadd.xlane.f32.xlu1 %v1344_v33 }
 0x32d   : > { %v1313_v42 = vmax.f32 %v1205_v37, 0.0  ;;  %v1208_v43 = vadd.f32 %v1791_v41, %v2212_v17  ;;  %v1199_v44 = vpop.f32.mrb[23].mxu0  ;;  %1375 = vadd.xlane.f32.xlu0 %v1343_v39 }
 0x32e   : > { %v1200_v45 = vadd.f32 %v1199_v44, %v2212_v17  ;;  %v1311_v46 = vmax.f32 %v1197_v40, 0.0 }
 0x32f   : > { %v1314_v47 = vmax.f32 %v1208_v43, 0.0  ;;  %v1349_v48 = vmul.f32 %v2217_v25, %v1313_v42 }
 0x330   : > { %v1312_v50 = vmax.f32 %v1200_v45, 0.0  ;;  %v1347_v54 = vmul.f32 %v2217_v25, %v1311_v46 }
 0x331   : > { %1387 = vadd.xlane.f32.xlu1 %v1349_v48  ;;  %1381 = vadd.xlane.f32.xlu0 %v1346_v49  ;;  %v1350_v55 = vmul.f32 %v2217_v25, %v1314_v47 }
 0x332   : > { %v1794_v51 = vpop.f32.mrb[24].mxu0  ;;  %v1348_v61 = vmul.f32 %v2217_v25, %v1312_v50 }
 0x333   : > { %v1221_v52 = vadd.f32 %v1794_v51, %v2212_v17  ;;  %v1212_v53 = vpop.f32.mrb[25].mxu0 }
 0x334   : > { %v1213_v56 = vadd.f32 %v1212_v53, %v2212_v17  ;;  %v1795_v57 = vpop.f32.mrb[26].mxu0 }
 0x335   : > { %v1317_v58 = vmax.f32 %v1221_v52, 0.0  ;;  %v1224_v59 = vadd.f32 %v1795_v57, %v2212_v17  ;;  %v1215_v60 = vpop.f32.mrb[27].mxu0  ;;  %1383 = vadd.xlane.f32.xlu1 %v1347_v54  ;;  %1389 = vadd.xlane.f32.xlu0 %v1350_v55 }
 0x336   : > { %v1315_v62 = vmax.f32 %v1213_v56, 0.0  ;;  %v1216_v0 = vadd.f32 %v1215_v60, %v2212_v17 }
 0x337   : > { %v1318_v63 = vmax.f32 %v1224_v59, 0.0  ;;  %v1353_v2 = vmul.f32 %v2217_v25, %v1317_v58 }
 0x338   : > { %v1316_v1 = vmax.f32 %v1216_v0, 0.0  ;;  %v1351_v6 = vmul.f32 %v2217_v25, %v1315_v62 }
 0x339   : > { %1395 = vadd.xlane.f32.xlu1 %v1353_v2  ;;  %1385 = vadd.xlane.f32.xlu0 %v1348_v61  ;;  %v1354_v7 = vmul.f32 %v2217_v25, %v1318_v63 }
 0x33a   : > { %v1798_v3 = vpop.f32.mrb[28].mxu0  ;;  %v1352_v18 = vmul.f32 %v2217_v25, %v1316_v1 }
 0x33b   : > { %v1237_v4 = vadd.f32 %v1798_v3, %v2212_v17  ;;  %v1228_v5 = vpop.f32.mrb[29].mxu0 }
 0x33c   : > { %v1229_v8 = vadd.f32 %v1228_v5, %v2212_v17  ;;  %v1799_v9 = vpop.f32.mrb[30].mxu0 }
 0x33d   : > { %v1321_v10 = vmax.f32 %v1237_v4, 0.0  ;;  %v1240_v11 = vadd.f32 %v1799_v9, %v2212_v17  ;;  %v1231_v12 = vpop.f32.mrb[31].mxu0  ;;  %1391 = vadd.xlane.f32.xlu1 %v1351_v6  ;;  %1397 = vadd.xlane.f32.xlu0 %v1354_v7 }
 0x33e   : > { %v1232_v13 = vadd.f32 %v1231_v12, %v2212_v17  ;;  %v1319_v14 = vmax.f32 %v1229_v8, 0.0 }
 0x33f   : > { %v1322_v15 = vmax.f32 %v1240_v11, 0.0  ;;  %v1357_v16 = vmul.f32 %v2217_v25, %v1321_v10 }
 0x340   : > { %v1320_v19 = vmax.f32 %v1232_v13, 0.0  ;;  %v1355_v23 = vmul.f32 %v2217_v25, %v1319_v14 }
 0x341   : > { %1403 = vadd.xlane.f32.xlu1 %v1357_v16  ;;  %1393 = vadd.xlane.f32.xlu0 %v1352_v18  ;;  %v1358_v24 = vmul.f32 %v2217_v25, %v1322_v15 }
 0x342   : > { %v1802_v20 = vpop.f32.mrb[32].mxu0  ;;  %v1356_v30 = vmul.f32 %v2217_v25, %v1320_v19 }
 0x343   : > { %v1253_v21 = vadd.f32 %v1802_v20, %v2212_v17  ;;  %v1244_v22 = vpop.f32.mrb[33].mxu0 }
 0x344   : > { %v1245_v35 = vadd.f32 %v1244_v22, %v2212_v17  ;;  %v1803_v26 = vpop.f32.mrb[34].mxu0 }
 0x345   : > { %v1325_v27 = vmax.f32 %v1253_v21, 0.0  ;;  %v1256_v28 = vadd.f32 %v1803_v26, %v2212_v17  ;;  %v1247_v29 = vpop.f32.mrb[35].mxu0  ;;  %1399 = vadd.xlane.f32.xlu1 %v1355_v23  ;;  %1405 = vadd.xlane.f32.xlu0 %v1358_v24 }
 0x346   : > { %v1323_v31 = vmax.f32 %v1245_v35, 0.0  ;;  %v1248_v36 = vadd.f32 %v1247_v29, %v2212_v17 }
 0x347   : > { %v1326_v33 = vmax.f32 %v1256_v28, 0.0  ;;  %v1361_v37 = vmul.f32 %v2217_v25, %v1325_v27 }
 0x348   : > { %v1324_v39 = vmax.f32 %v1248_v36, 0.0  ;;  %v1359_v42 = vmul.f32 %v2217_v25, %v1323_v31 }
 0x349   : > { %1411 = vadd.xlane.f32.xlu1 %v1361_v37  ;;  %1401 = vadd.xlane.f32.xlu0 %v1356_v30  ;;  %v1362_v43 = vmul.f32 %v2217_v25, %v1326_v33 }
 0x34a   : > { %v1806_v38 = vpop.f32.mrb[36].mxu0  ;;  %v1360_v53 = vmul.f32 %v2217_v25, %v1324_v39 }
 0x34b   : > { %v1269_v40 = vadd.f32 %v1806_v38, %v2212_v17  ;;  %v1260_v41 = vpop.f32.mrb[37].mxu0 }
 0x34c   : > { %v1261_v44 = vadd.f32 %v1260_v41, %v2212_v17  ;;  %v1807_v45 = vpop.f32.mrb[38].mxu0 }
 0x34d   : > { %v1329_v46 = vmax.f32 %v1269_v40, 0.0  ;;  %v1272_v47 = vadd.f32 %v1807_v45, %v2212_v17  ;;  %v1263_v48 = vpop.f32.mrb[39].mxu0  ;;  %1407 = vadd.xlane.f32.xlu1 %v1359_v42  ;;  %1413 = vadd.xlane.f32.xlu0 %v1362_v43 }
 0x34e   : > { %v1264_v49 = vadd.f32 %v1263_v48, %v2212_v17  ;;  %v1327_v50 = vmax.f32 %v1261_v44, 0.0 }
 0x34f   : > { %v1330_v51 = vmax.f32 %v1272_v47, 0.0  ;;  %v1365_v52 = vmul.f32 %v2217_v25, %v1329_v46 }
 0x350   : > { %v1328_v54 = vmax.f32 %v1264_v49, 0.0  ;;  %v1363_v58 = vmul.f32 %v2217_v25, %v1327_v50 }
 0x351   : > { %1419 = vadd.xlane.f32.xlu1 %v1365_v52  ;;  %1409 = vadd.xlane.f32.xlu0 %v1360_v53  ;;  %v1366_v59 = vmul.f32 %v2217_v25, %v1330_v51 }
 0x352   : > { %v1810_v55 = vpop.f32.mrb[40].mxu0  ;;  %v1364_v2 = vmul.f32 %v2217_v25, %v1328_v54 }
 0x353   : > { %v1285_v56 = vadd.f32 %v1810_v55, %v2212_v17  ;;  %v1276_v57 = vpop.f32.mrb[41].mxu0 }
 0x354   : > { %v1277_v60 = vadd.f32 %v1276_v57, %v2212_v17  ;;  %v1811_v61 = vpop.f32.mrb[42].mxu0 }
 0x355   : > { %v1333_v62 = vmax.f32 %v1285_v56, 0.0  ;;  %v1288_v63 = vadd.f32 %v1811_v61, %v2212_v17  ;;  %v1279_v0 = vpop.f32.mrb[43].mxu0  ;;  %1415 = vadd.xlane.f32.xlu1 %v1363_v58  ;;  %1421 = vadd.xlane.f32.xlu0 %v1366_v59 }
 0x356   : > { %v1331_v3 = vmax.f32 %v1277_v60, 0.0  ;;  %v1280_v4 = vadd.f32 %v1279_v0, %v2212_v17 }
 0x357   : > { %v1334_v1 = vmax.f32 %v1288_v63, 0.0  ;;  %v1369_v5 = vmul.f32 %v2217_v25, %v1333_v62 }
 0x358   : > { %v1332_v7 = vmax.f32 %v1280_v4, 0.0  ;;  %v1367_v9 = vmul.f32 %v2217_v25, %v1331_v3 }
 0x359   : > { %1427 = vadd.xlane.f32.xlu1 %v1369_v5  ;;  %1417 = vadd.xlane.f32.xlu0 %v1364_v2  ;;  %v1370_v10 = vmul.f32 %v2217_v25, %v1334_v1 }
 0x35a   : > { %v1814_v6 = vpop.f32.mrb[44].mxu0  ;;  %v1368_v20 = vmul.f32 %v2217_v25, %v1332_v7 }
 0x35b   : > { %v1292_v8 = vpop.f32.mrb[45].mxu0  ;;  %v1301_v11 = vadd.f32 %v1814_v6, %v2212_v17 }
 0x35c   : > { %v1293_v12 = vadd.f32 %v1292_v8, %v2212_v17  ;;  %v1815_v13 = vpop.f32.mrb[46].mxu0 }
 0x35d   : > { %v1304_v14 = vadd.f32 %v1815_v13, %v2212_v17  ;;  %v1295_v15 = vpop.f32.mrb[47].mxu0  ;;  %1423 = vadd.xlane.f32.xlu1 %v1367_v9  ;;  %1429 = vadd.xlane.f32.xlu0 %v1370_v10  ;;  %v1337_v21 = vmax.f32 %v1301_v11, 0.0 }
 0x35e   : > { %v1335_v16 = vmax.f32 %v1293_v12, 0.0  ;;  %v1296_v18 = vadd.f32 %v1295_v15, %v2212_v17  ;;  %v1441_v17 = vsub.s32 4, %v2125_v32 }
 0x35f   : > { %v1338_v19 = vmax.f32 %v1304_v14, 0.0  ;;  %v1373_v26 = vmul.f32 %v2217_v25, %v1337_v21 }
 0x360   : > { %v1336_v22 = vmax.f32 %v1296_v18, 0.0  ;;  %v1371_v23 = vmul.f32 %v2217_v25, %v1335_v16  ;;  %v2284_v27 = vrot.slane %v2131_v34, %v1441_v17 }
 0x361   : > { %1425 = vadd.xlane.f32.xlu0 %v1368_v20  ;;  %v1374_v24 = vmul.f32 %v2217_v25, %v1338_v19 }
 0x362   : > { %1431 = vadd.xlane.f32.xlu1 %v1371_v23  ;;  %v1372_v35 = vmul.f32 %v2217_v25, %v1336_v22 }
 0x365   : > { %1433 = vadd.xlane.f32.xlu0 %v1372_v35 }
 0x366   : > { %1435 = vadd.xlane.f32.xlu1 %v1373_v26 }
 0x369   : > { %1437 = vadd.xlane.f32.xlu0 %v1374_v24 }
 0x3b6   : > { %v1380_v28 = vpop.xlane.xlu0 %1379 }
 0x3b7   : > { %v1445_v25 = vadd.f32 %v2284_v27, %v1380_v28 }
 0x3b9   : > { %1477 = vst [vmem:[%s2290_s14 + $0x10] sm:$0xff] %v1445_v25  ;;  %v1378_v29 = vpop.xlane.xlu1 %1377 }
 0x3ba   : > { %v1444_v32 = vadd.f32 %v2284_v27, %v1378_v29  ;;  %v1376_v34 = vpop.xlane.xlu0 %1375 }
 0x3bb   : > { %v1443_v30 = vadd.f32 %v2284_v27, %v1376_v34 }
 0x3bc   : > { %1476 = vst [vmem:[%s2290_s14 + $0x8] sm:$0xff] %v1444_v32 }
 0x3bd   : > { %1475 = vst [vmem:[%s2290_s14] sm:$0xff] %v1443_v30 }
 0x3be   : > { %v1388_v31 = vpop.xlane.xlu1 %1387  ;;  %v1382_v33 = vpop.xlane.xlu0 %1381 }
 0x3bf   : > { %v1449_v36 = vadd.f32 %v2284_v27, %v1388_v31  ;;  %v1446_v37 = vadd.f32 %v2284_v27, %v1382_v33 }
 0x3c1   : > { %1481 = vst [vmem:[%s2290_s14 + $0x30] sm:$0xff] %v1449_v36  ;;  %1478 = vst [vmem:[%s2290_s14 + $0x18] sm:$0xff] %v1446_v37 }
 0x3c2   : > { %v1384_v38 = vpop.xlane.xlu1 %1383  ;;  %v1390_v39 = vpop.xlane.xlu0 %1389 }
 0x3c3   : > { %v1447_v40 = vadd.f32 %v2284_v27, %v1384_v38  ;;  %v1450_v41 = vadd.f32 %v2284_v27, %v1390_v39 }
 0x3c5   : > { %1479 = vst [vmem:[%s2290_s14 + $0x20] sm:$0xff] %v1447_v40  ;;  %1482 = vst [vmem:[%s2290_s14 + $0x38] sm:$0xff] %v1450_v41 }
 0x3c6   : > { %v1396_v42 = vpop.xlane.xlu1 %1395  ;;  %v1386_v43 = vpop.xlane.xlu0 %1385 }
 0x3c7   : > { %v1453_v44 = vadd.f32 %v2284_v27, %v1396_v42  ;;  %v1448_v45 = vadd.f32 %v2284_v27, %v1386_v43 }
 0x3c9   : > { %1485 = vst [vmem:[%s2290_s14 + $0x50] sm:$0xff] %v1453_v44  ;;  %1480 = vst [vmem:[%s2290_s14 + $0x28] sm:$0xff] %v1448_v45 }
 0x3ca   : > { %v1392_v46 = vpop.xlane.xlu1 %1391  ;;  %v1398_v47 = vpop.xlane.xlu0 %1397 }
 0x3cb   : > { %v1451_v48 = vadd.f32 %v2284_v27, %v1392_v46  ;;  %v1454_v49 = vadd.f32 %v2284_v27, %v1398_v47 }
 0x3cd   : > { %1483 = vst [vmem:[%s2290_s14 + $0x40] sm:$0xff] %v1451_v48  ;;  %1486 = vst [vmem:[%s2290_s14 + $0x58] sm:$0xff] %v1454_v49 }
 0x3ce   : > { %v1404_v50 = vpop.xlane.xlu1 %1403  ;;  %v1394_v51 = vpop.xlane.xlu0 %1393 }
 0x3cf   : > { %v1457_v52 = vadd.f32 %v2284_v27, %v1404_v50  ;;  %v1452_v53 = vadd.f32 %v2284_v27, %v1394_v51 }
 0x3d1   : > { %1489 = vst [vmem:[%s2290_s14 + $0x70] sm:$0xff] %v1457_v52  ;;  %1484 = vst [vmem:[%s2290_s14 + $0x48] sm:$0xff] %v1452_v53 }
 0x3d2   : > { %v1400_v54 = vpop.xlane.xlu1 %1399  ;;  %v1406_v55 = vpop.xlane.xlu0 %1405 }
 0x3d3   : > { %v1455_v56 = vadd.f32 %v2284_v27, %v1400_v54  ;;  %v1458_v57 = vadd.f32 %v2284_v27, %v1406_v55 }
 0x3d5   : > { %1487 = vst [vmem:[%s2290_s14 + $0x60] sm:$0xff] %v1455_v56  ;;  %1490 = vst [vmem:[%s2290_s14 + $0x78] sm:$0xff] %v1458_v57 }
 0x3d6   : > { %v1412_v58 = vpop.xlane.xlu1 %1411  ;;  %v1402_v59 = vpop.xlane.xlu0 %1401 }
 0x3d7   : > { %v1461_v60 = vadd.f32 %v2284_v27, %v1412_v58  ;;  %v1456_v61 = vadd.f32 %v2284_v27, %v1402_v59 }
 0x3d9   : > { %1493 = vst [vmem:[%s2290_s14 + $0x90] sm:$0xff] %v1461_v60  ;;  %1488 = vst [vmem:[%s2290_s14 + $0x68] sm:$0xff] %v1456_v61 }
 0x3da   : > { %v1408_v62 = vpop.xlane.xlu1 %1407  ;;  %v1414_v63 = vpop.xlane.xlu0 %1413 }
 0x3db   : > { %v1459_v0 = vadd.f32 %v2284_v27, %v1408_v62  ;;  %v1462_v2 = vadd.f32 %v2284_v27, %v1414_v63 }
 0x3dd   : > { %1491 = vst [vmem:[%s2290_s14 + $0x80] sm:$0xff] %v1459_v0  ;;  %1494 = vst [vmem:[%s2290_s14 + $0x98] sm:$0xff] %v1462_v2 }
 0x3de   : > { %v1420_v3 = vpop.xlane.xlu1 %1419  ;;  %v1410_v1 = vpop.xlane.xlu0 %1409 }
 0x3df   : > { %v1465_v4 = vadd.f32 %v2284_v27, %v1420_v3  ;;  %v1460_v5 = vadd.f32 %v2284_v27, %v1410_v1 }
 0x3e1   : > { %1497 = vst [vmem:[%s2290_s14 + $0xb0] sm:$0xff] %v1465_v4  ;;  %1492 = vst [vmem:[%s2290_s14 + $0x88] sm:$0xff] %v1460_v5 }
 0x3e2   : > { %v1416_v6 = vpop.xlane.xlu1 %1415  ;;  %v1422_v7 = vpop.xlane.xlu0 %1421 }
 0x3e3   : > { %v1463_v8 = vadd.f32 %v2284_v27, %v1416_v6  ;;  %v1466_v9 = vadd.f32 %v2284_v27, %v1422_v7 }
 0x3e5   : > { %1495 = vst [vmem:[%s2290_s14 + $0xa0] sm:$0xff] %v1463_v8  ;;  %1498 = vst [vmem:[%s2290_s14 + $0xb8] sm:$0xff] %v1466_v9 }
 0x3e6   : > { %v1428_v10 = vpop.xlane.xlu1 %1427  ;;  %v1418_v11 = vpop.xlane.xlu0 %1417 }
 0x3e7   : > { %v1469_v12 = vadd.f32 %v2284_v27, %v1428_v10  ;;  %v1464_v13 = vadd.f32 %v2284_v27, %v1418_v11 }
 0x3e9   : > { %1501 = vst [vmem:[%s2290_s14 + $0xd0] sm:$0xff] %v1469_v12  ;;  %1496 = vst [vmem:[%s2290_s14 + $0xa8] sm:$0xff] %v1464_v13 }
 0x3ea   : > { %v1424_v14 = vpop.xlane.xlu1 %1423  ;;  %v1430_v15 = vpop.xlane.xlu0 %1429 }
 0x3eb   : > { %v1467_v16 = vadd.f32 %v2284_v27, %v1424_v14  ;;  %v1470_v18 = vadd.f32 %v2284_v27, %v1430_v15 }
 0x3ed   : > { %1499 = vst [vmem:[%s2290_s14 + $0xc0] sm:$0xff] %v1467_v16  ;;  %1502 = vst [vmem:[%s2290_s14 + $0xd8] sm:$0xff] %v1470_v18 }
 0x3ee   : > { %v1426_v19 = vpop.xlane.xlu0 %1425 }
 0x3ef   : > { %v1468_v20 = vadd.f32 %v2284_v27, %v1426_v19  ;;  %v1432_v21 = vpop.xlane.xlu1 %1431 }
 0x3f0   : > { %v1471_v22 = vadd.f32 %v2284_v27, %v1432_v21 }
 0x3f1   : > { %1500 = vst [vmem:[%s2290_s14 + $0xc8] sm:$0xff] %v1468_v20 }
 0x3f2   : > { %1503 = vst [vmem:[%s2290_s14 + $0xe0] sm:$0xff] %v1471_v22  ;;  %v1434_v23 = vpop.xlane.xlu0 %1433 }
 0x3f3   : > { %v1472_v24 = vadd.f32 %v2284_v27, %v1434_v23  ;;  %v1436_v35 = vpop.xlane.xlu1 %1435 }
 0x3f4   : > { %v1473_v26 = vadd.f32 %v2284_v27, %v1436_v35 }
 0x3f5   : > { %1504 = vst [vmem:[%s2290_s14 + $0xe8] sm:$0xff] %v1472_v24 }
 0x3f6   : > { %1505 = vst [vmem:[%s2290_s14 + $0xf0] sm:$0xff] %v1473_v26  ;;  %v1438_v17 = vpop.xlane.xlu0 %1437 }
 0x3f7   : > { %v1474_v28 = vadd.f32 %v2284_v27, %v1438_v17 }
 0x3f9   : > { %1506 = vst [vmem:[%s2290_s14 + $0xf8] sm:$0xff] %v1474_v28 }
 0x3fa PF: > { %s14_s15 = sadd.s32 1, %s1850_s15  }
 0x3fb   : > { %p11_p4 = scmp.ge.s32.totalorder %s14_s15, 4  }
 0x3fd   :  { %13 = sbr.rel (!%p11_p4) target bundleno = 1 (0x1), region = 69 }

</bundles_post_ra>
